<compile_context>
chip_gen: v7x
topology: tpu7x:2x2x1
jax: 0.10.0
libtpu: 0.0.40
codegen_flags: <defaults>
</compile_context>

<pallas_src>
import jax
import jax.numpy as jnp
from jax.experimental import pallas as pl
from jax.experimental.pallas import tpu as pltpu

INPUT_SIZE = 2
HIDDEN_SIZE = 50
OUTPUT_SIZE = 1
HPAD = 128          # per-gate padded width (lane-aligned)
MAX_UNROLL = 8      # cap on recurrence unroll (vreg-pressure guard)


def _lstm_kernel(x_ref, wih_ref, whh_ref, b_ref, wlin_ref, blin_ref,
                 out_ref, xg_ref):
    Bp = out_ref.shape[0]             # padded batch (multiple of 8)
    Hp = whh_ref.shape[0]             # padded hidden width per gate (128)
    I = x_ref.shape[1]                # input features (2)
    T = x_ref.shape[0] // Bp          # number of timesteps (static)

    # ---- Prologue: input projection + bias for ALL timesteps, on the VPU. ----
    # K = 2 would occupy 2/128 (v5e) or 2/256 (v6e/v7x) of the MXU yet still
    # pay full push/pop latency; two broadcast FMAs are cheaper and keep the
    # MXU pipe free for the first recurrent step.
    x_all = x_ref[...]                                          # (T*Bp, I)
    xg = x_all[:, 0:1] * wih_ref[0:1, :]
    for k in range(1, I):                                       # static loop
        xg = xg + x_all[:, k:k + 1] * wih_ref[k:k + 1, :]
    xg_ref[...] = xg + b_ref[...]

    h0 = jnp.zeros((Bp, Hp), jnp.float32)
    c0 = jnp.zeros((Bp, Hp), jnp.float32)

    def step(t, carry):
        h, c = carry
        row = pl.multiple_of(t * Bp, Bp)
        xg_t = xg_ref[pl.ds(row, Bp), :]                        # (Bp, 4*Hp)
        gates = xg_t + jnp.dot(h, whh_ref[...],
                               preferred_element_type=jnp.float32)
        # Single contiguous EUP pass over all 4 gates. The i/f/o columns of
        # W_ih, W_hh and the bias were pre-scaled by 0.5 at pack time, so
        #   sigmoid(z) = 0.5 * tanh(0.5 * z) + 0.5 = 0.5 * act + 0.5
        # while the g gate reads tanh(z) = act directly.
        # Padded lanes: zero weights/bias -> act = 0 -> i/f/o = 0.5, g = 0,
        # so padded c and h lanes stay exactly 0 (with c0 = 0).
        act = jnp.tanh(gates)
        sig = 0.5 * act[:, :3 * Hp] + 0.5                       # VPU FMA
        i_g = sig[:, 0 * Hp:1 * Hp]
        f_g = sig[:, 1 * Hp:2 * Hp]
        o_g = sig[:, 2 * Hp:3 * Hp]
        g_g = act[:, 3 * Hp:]
        c_new = f_g * c + i_g * g_g
        h_new = o_g * jnp.tanh(c_new)
        return h_new, c_new

    h_last, _ = jax.lax.fori_loop(0, T, step, (h0, c0),
                                  unroll=min(T, MAX_UNROLL))

    # ---- Epilogue: final Linear (O = 1) as VPU multiply + XLU lane-reduce.
    # No MXU push/drain on the tail; w_lin's padded columns are zero so padded
    # hidden lanes cannot leak into the output.
    out_ref[...] = (jnp.sum(h_last * wlin_ref[...], axis=-1, keepdims=True)
                    + blin_ref[...])


@jax.jit
def carbon_lstm_forward(x, w_ih_p, w_hh_p, b_p, w_lin_p, b_lin_p):
    """x: (B, T, I) batch-first (PyTorch convention). Returns (B, OUTPUT_SIZE)."""
    B, T, I = x.shape
    Hp = w_hh_p.shape[0]
    O = b_lin_p.shape[1]
    Bp = ((B + 7) // 8) * 8                                   # sublane-pad batch

    # Scratch guardrail: hoisted projection slab is T*Bp*4*Hp*4 bytes (16 KiB
    # per timestep at Bp=8). Chunk the time axis (emit_pipeline over T-chunks)
    # before this nears v7x's 32 MiB scoped / 64 MiB physical VMEM.
    assert T * Bp * 4 * Hp * 4 < 16 * 2**20, "chunk T: xg scratch too large"

    # Layout prep (fused into this jit). For production, accept the padded
    # time-major (T*Bp, I) layout as the API and drop these HLOs + the slice.
    x_p = jnp.pad(x, ((0, Bp - B), (0, 0), (0, 0)))
    x_tm = jnp.transpose(x_p, (1, 0, 2)).reshape(T * Bp, I)

    vmem = pl.BlockSpec(memory_space=pltpu.MemorySpace.VMEM)
    out = pl.pallas_call(
        _lstm_kernel,
        out_shape=jax.ShapeDtypeStruct((Bp, O), jnp.float32),
        in_specs=[vmem] * 6,
        out_specs=vmem,
        scratch_shapes=[pltpu.VMEM((T * Bp, 4 * Hp), jnp.float32)],  # hoisted proj
    )(x_tm, w_ih_p, w_hh_p, b_p, w_lin_p, b_lin_p)
    return out[:B]


# ----------------------------- parameter handling -----------------------------

def init_raw_params(key, input_size=INPUT_SIZE, hidden_size=HIDDEN_SIZE,
                    output_size=OUTPUT_SIZE):
    """PyTorch-shaped LSTM/Linear parameters (gate row order [i, f, g, o])."""
    ks = jax.random.split(key, 6)
    s = 1.0 / jnp.sqrt(hidden_size)
    w_ih = jax.random.uniform(ks[0], (4 * hidden_size, input_size), jnp.float32, -s, s)
    w_hh = jax.random.uniform(ks[1], (4 * hidden_size, hidden_size), jnp.float32, -s, s)
    b_ih = jax.random.uniform(ks[2], (4 * hidden_size,), jnp.float32, -s, s)
    b_hh = jax.random.uniform(ks[3], (4 * hidden_size,), jnp.float32, -s, s)
    w_lin = jax.random.uniform(ks[4], (output_size, hidden_size), jnp.float32, -s, s)
    b_lin = jax.random.uniform(ks[5], (output_size,), jnp.float32, -s, s)
    return w_ih, w_hh, b_ih, b_hh, w_lin, b_lin


def _split_gates(w, H):
    """PyTorch (4H, ...) rows -> gate blocks in PyTorch order [i, f, g, o]."""
    return tuple(w[k * H:(k + 1) * H] for k in range(4))


def _pack_gate_rows(blocks, hpad):
    """Gate blocks in kernel order [i, f, o, g], each (H, ...), zero-padded to
    hpad rows and concatenated to (4*hpad, ...)."""
    out = jnp.zeros((4 * hpad,) + blocks[0].shape[1:], blocks[0].dtype)
    H = blocks[0].shape[0]
    for k, blk in enumerate(blocks):
        out = out.at[k * hpad:k * hpad + H].set(blk)
    return out


def pack_params(w_ih, w_hh, b_ih, b_hh, w_lin, b_lin,
                hidden_size=HIDDEN_SIZE, hpad=HPAD):
    """Pre-transpose / pad / gate-reorder params for the kernel.

    Kernel gate order is [i, f, o, g]; the sigmoid gates (i, f, o) are
    pre-scaled by 0.5 so the kernel evaluates all activations with one tanh
    pass. All padding is strictly zero (padded-lane invariant relies on this).
    """
    H = hidden_size
    assert w_lin.shape[0] == 1, "kernel epilogue is specialized to output_size=1"

    def reorder_and_scale(w):
        i, f, g, o = _split_gates(w, H)            # PyTorch order
        return (0.5 * i, 0.5 * f, 0.5 * o, g)      # kernel order, sigmoids scaled

    w_ih_p = _pack_gate_rows(reorder_and_scale(w_ih), hpad).T           # (I, 4*Hp)
    w_hh_p = jnp.pad(_pack_gate_rows(reorder_and_scale(w_hh), hpad),
                     ((0, 0), (0, hpad - H))).T                         # (Hp, 4*Hp)
    b_p = _pack_gate_rows(reorder_and_scale((b_ih + b_hh)[:, None]), hpad).T  # (1, 4*Hp)
    w_lin_p = jnp.pad(w_lin, ((0, 0), (0, hpad - H)))                   # (1, Hp)
    b_lin_p = b_lin.reshape(1, -1)                                      # (1, 1)
    return w_ih_p, w_hh_p, b_p, w_lin_p, b_lin_p


def _reference_forward(x, w_ih, w_hh, b_ih, b_hh, w_lin, b_lin):
    """Pure-JAX reference matching PyTorch nn.LSTM + Linear semantics."""
    B, T, I = x.shape
    H = w_hh.shape[1]
    h = jnp.zeros((B, H), jnp.float32)
    c = jnp.zeros((B, H), jnp.float32)

    def step(carry, x_t):
        h, c = carry
        gates = x_t @ w_ih.T + h @ w_hh.T + b_ih + b_hh
        i_g = jax.nn.sigmoid(gates[:, 0 * H:1 * H])
        f_g = jax.nn.sigmoid(gates[:, 1 * H:2 * H])
        g_g = jnp.tanh(gates[:, 2 * H:3 * H])
        o_g = jax.nn.sigmoid(gates[:, 3 * H:4 * H])
        c = f_g * c + i_g * g_g
        h = o_g * jnp.tanh(c)
        return (h, c), None

    (h, c), _ = jax.lax.scan(step, (h, c), jnp.transpose(x, (1, 0, 2)))
    return h @ w_lin.T + b_lin


if __name__ == "__main__":
    key = jax.random.PRNGKey(0)
    k_x, k_p = jax.random.split(key)

    B, T = 4, 8
    x = jax.random.normal(k_x, (B, T, INPUT_SIZE), jnp.float32)

    raw_params = init_raw_params(k_p)
    packed_params = pack_params(*raw_params)

    out = carbon_lstm_forward(x, *packed_params)
    out = jax.block_until_ready(out)

    ref = _reference_forward(x, *raw_params)
    assert out.shape == (B, OUTPUT_SIZE)
    assert jnp.allclose(out, ref, rtol=1e-4, atol=1e-4), (out, ref)

    print("KERNEL_OK")
</pallas_src>

<mosaic_0001>
module attributes {stable_mosaic.version = 11 : i64} {
  func.func @_lstm_kernel(%arg0: memref<64x2xf32, #tpu.memory_space<vmem>>, %arg1: memref<2x512xf32, #tpu.memory_space<vmem>>, %arg2: memref<128x512xf32, #tpu.memory_space<vmem>>, %arg3: memref<1x512xf32, #tpu.memory_space<vmem>>, %arg4: memref<1x128xf32, #tpu.memory_space<vmem>>, %arg5: memref<1x1xf32, #tpu.memory_space<vmem>>, %arg6: memref<8x1xf32, #tpu.memory_space<vmem>>, %arg7: memref<64x512xf32, #tpu.memory_space<vmem>>) attributes {dimension_semantics = [], scalar_prefetch = 0 : i64, scratch_operands = 1 : i64, tpu.core_type = #tpu.core_type<tc>} {
    %c0 = arith.constant 0 : index
    %c0_0 = arith.constant 0 : index
    %0 = vector.load %arg0[%c0, %c0_0] : memref<64x2xf32, #tpu.memory_space<vmem>>, vector<64x2xf32>
    %1 = vector.extract_strided_slice %0 {offsets = [0, 0], sizes = [64, 1], strides = [1, 1]} : vector<64x2xf32> to vector<64x1xf32>
    %c0_1 = arith.constant 0 : index
    %c0_2 = arith.constant 0 : index
    %2 = vector.load %arg1[%c0_1, %c0_2] : memref<2x512xf32, #tpu.memory_space<vmem>>, vector<1x512xf32>
    %3 = vector.broadcast %1 : vector<64x1xf32> to vector<64x512xf32>
    %4 = vector.broadcast %2 : vector<1x512xf32> to vector<64x512xf32>
    %5 = arith.mulf %3, %4 : vector<64x512xf32>
    %6 = vector.extract_strided_slice %0 {offsets = [0, 1], sizes = [64, 1], strides = [1, 1]} : vector<64x2xf32> to vector<64x1xf32>
    %c1 = arith.constant 1 : index
    %c0_3 = arith.constant 0 : index
    %7 = vector.load %arg1[%c1, %c0_3] : memref<2x512xf32, #tpu.memory_space<vmem>>, vector<1x512xf32>
    %8 = vector.broadcast %6 : vector<64x1xf32> to vector<64x512xf32>
    %9 = vector.broadcast %7 : vector<1x512xf32> to vector<64x512xf32>
    %10 = arith.mulf %8, %9 : vector<64x512xf32>
    %11 = arith.addf %5, %10 : vector<64x512xf32>
    %c0_4 = arith.constant 0 : index
    %c0_5 = arith.constant 0 : index
    %12 = vector.load %arg3[%c0_4, %c0_5] : memref<1x512xf32, #tpu.memory_space<vmem>>, vector<1x512xf32>
    %13 = vector.broadcast %12 : vector<1x512xf32> to vector<64x512xf32>
    %14 = arith.addf %11, %13 : vector<64x512xf32>
    %c0_6 = arith.constant 0 : index
    %c0_7 = arith.constant 0 : index
    %15 = vector.load %arg7[%c0_6, %c0_7] : memref<64x512xf32, #tpu.memory_space<vmem>>, vector<64x512xf32>
    tpu.vector_store %arg7[%c0_6, %c0_7], %14 {strides = array<i32>} : memref<64x512xf32, #tpu.memory_space<vmem>>, vector<64x512xf32>,
    %cst = arith.constant 0.000000e+00 : f32
    %16 = vector.broadcast %cst : f32 to vector<8x128xf32>
    %cst_8 = arith.constant 0.000000e+00 : f32
    %17 = vector.broadcast %cst_8 : f32 to vector<8x128xf32>
    %c0_i32 = arith.constant 0 : i32
    %c8_i32 = arith.constant 8 : i32
    %18 = arith.muli %c0_i32, %c8_i32 : i32
    %19 = tpu.assume_multiple %18, 8 : i32
    %20 = arith.index_cast %19 : i32 to index
    %c0_9 = arith.constant 0 : index
    %21 = vector.load %arg7[%20, %c0_9] : memref<64x512xf32, #tpu.memory_space<vmem>>, vector<8x512xf32>
    %c0_10 = arith.constant 0 : index
    %c0_11 = arith.constant 0 : index
    %22 = vector.load %arg2[%c0_10, %c0_11] : memref<128x512xf32, #tpu.memory_space<vmem>>, vector<128x512xf32>
    %cst_12 = arith.constant dense<0.000000e+00> : vector<8x512xf32>
    %23 = tpu.matmul %16, %22, %cst_12 {dimension_numbers = #tpu.dot_dimension_numbers<[1], [0], [0], [1], [0, 0, 1, 1], [], []>} : vector<8x128xf32>, vector<128x512xf32>, vector<8x512xf32> -> vector<8x512xf32>
    %24 = arith.addf %21, %23 : vector<8x512xf32>
    %25 = math.tanh %24 : vector<8x512xf32>
    %26 = vector.extract_strided_slice %25 {offsets = [0, 0], sizes = [8, 384], strides = [1, 1]} : vector<8x512xf32> to vector<8x384xf32>
    %cst_13 = arith.constant 5.000000e-01 : f32
    %27 = vector.broadcast %cst_13 : f32 to vector<8x384xf32>
    %28 = arith.mulf %27, %26 : vector<8x384xf32>
    %cst_14 = arith.constant 5.000000e-01 : f32
    %29 = vector.broadcast %cst_14 : f32 to vector<8x384xf32>
    %30 = arith.addf %28, %29 : vector<8x384xf32>
    %31 = vector.extract_strided_slice %30 {offsets = [0, 0], sizes = [8, 128], strides = [1, 1]} : vector<8x384xf32> to vector<8x128xf32>
    %32 = vector.extract_strided_slice %30 {offsets = [0, 128], sizes = [8, 128], strides = [1, 1]} : vector<8x384xf32> to vector<8x128xf32>
    %33 = vector.extract_strided_slice %30 {offsets = [0, 256], sizes = [8, 128], strides = [1, 1]} : vector<8x384xf32> to vector<8x128xf32>
    %34 = vector.extract_strided_slice %25 {offsets = [0, 384], sizes = [8, 128], strides = [1, 1]} : vector<8x512xf32> to vector<8x128xf32>
    %35 = arith.mulf %32, %17 : vector<8x128xf32>
    %36 = arith.mulf %31, %34 : vector<8x128xf32>
    %37 = arith.addf %35, %36 : vector<8x128xf32>
    %38 = math.tanh %37 : vector<8x128xf32>
    %39 = arith.mulf %33, %38 : vector<8x128xf32>
    %c1_i32 = arith.constant 1 : i32
    %c8_i32_15 = arith.constant 8 : i32
    %40 = arith.muli %c1_i32, %c8_i32_15 : i32
    %41 = tpu.assume_multiple %40, 8 : i32
    %42 = arith.index_cast %41 : i32 to index
    %c0_16 = arith.constant 0 : index
    %43 = vector.load %arg7[%42, %c0_16] : memref<64x512xf32, #tpu.memory_space<vmem>>, vector<8x512xf32>
    %c0_17 = arith.constant 0 : index
    %c0_18 = arith.constant 0 : index
    %44 = vector.load %arg2[%c0_17, %c0_18] : memref<128x512xf32, #tpu.memory_space<vmem>>, vector<128x512xf32>
    %cst_19 = arith.constant dense<0.000000e+00> : vector<8x512xf32>
    %45 = tpu.matmul %39, %44, %cst_19 {dimension_numbers = #tpu.dot_dimension_numbers<[1], [0], [0], [1], [0, 0, 1, 1], [], []>} : vector<8x128xf32>, vector<128x512xf32>, vector<8x512xf32> -> vector<8x512xf32>
    %46 = arith.addf %43, %45 : vector<8x512xf32>
    %47 = math.tanh %46 : vector<8x512xf32>
    %48 = vector.extract_strided_slice %47 {offsets = [0, 0], sizes = [8, 384], strides = [1, 1]} : vector<8x512xf32> to vector<8x384xf32>
    %cst_20 = arith.constant 5.000000e-01 : f32
    %49 = vector.broadcast %cst_20 : f32 to vector<8x384xf32>
    %50 = arith.mulf %49, %48 : vector<8x384xf32>
    %cst_21 = arith.constant 5.000000e-01 : f32
    %51 = vector.broadcast %cst_21 : f32 to vector<8x384xf32>
    %52 = arith.addf %50, %51 : vector<8x384xf32>
    %53 = vector.extract_strided_slice %52 {offsets = [0, 0], sizes = [8, 128], strides = [1, 1]} : vector<8x384xf32> to vector<8x128xf32>
    %54 = vector.extract_strided_slice %52 {offsets = [0, 128], sizes = [8, 128], strides = [1, 1]} : vector<8x384xf32> to vector<8x128xf32>
    %55 = vector.extract_strided_slice %52 {offsets = [0, 256], sizes = [8, 128], strides = [1, 1]} : vector<8x384xf32> to vector<8x128xf32>
    %56 = vector.extract_strided_slice %47 {offsets = [0, 384], sizes = [8, 128], strides = [1, 1]} : vector<8x512xf32> to vector<8x128xf32>
    %57 = arith.mulf %54, %37 : vector<8x128xf32>
    %58 = arith.mulf %53, %56 : vector<8x128xf32>
    %59 = arith.addf %57, %58 : vector<8x128xf32>
    %60 = math.tanh %59 : vector<8x128xf32>
    %61 = arith.mulf %55, %60 : vector<8x128xf32>
    %c2_i32 = arith.constant 2 : i32
    %c8_i32_22 = arith.constant 8 : i32
    %62 = arith.muli %c2_i32, %c8_i32_22 : i32
    %63 = tpu.assume_multiple %62, 8 : i32
    %64 = arith.index_cast %63 : i32 to index
    %c0_23 = arith.constant 0 : index
    %65 = vector.load %arg7[%64, %c0_23] : memref<64x512xf32, #tpu.memory_space<vmem>>, vector<8x512xf32>
    %c0_24 = arith.constant 0 : index
    %c0_25 = arith.constant 0 : index
    %66 = vector.load %arg2[%c0_24, %c0_25] : memref<128x512xf32, #tpu.memory_space<vmem>>, vector<128x512xf32>
    %cst_26 = arith.constant dense<0.000000e+00> : vector<8x512xf32>
    %67 = tpu.matmul %61, %66, %cst_26 {dimension_numbers = #tpu.dot_dimension_numbers<[1], [0], [0], [1], [0, 0, 1, 1], [], []>} : vector<8x128xf32>, vector<128x512xf32>, vector<8x512xf32> -> vector<8x512xf32>
    %68 = arith.addf %65, %67 : vector<8x512xf32>
    %69 = math.tanh %68 : vector<8x512xf32>
    %70 = vector.extract_strided_slice %69 {offsets = [0, 0], sizes = [8, 384], strides = [1, 1]} : vector<8x512xf32> to vector<8x384xf32>
    %cst_27 = arith.constant 5.000000e-01 : f32
    %71 = vector.broadcast %cst_27 : f32 to vector<8x384xf32>
    %72 = arith.mulf %71, %70 : vector<8x384xf32>
    %cst_28 = arith.constant 5.000000e-01 : f32
    %73 = vector.broadcast %cst_28 : f32 to vector<8x384xf32>
    %74 = arith.addf %72, %73 : vector<8x384xf32>
    %75 = vector.extract_strided_slice %74 {offsets = [0, 0], sizes = [8, 128], strides = [1, 1]} : vector<8x384xf32> to vector<8x128xf32>
    %76 = vector.extract_strided_slice %74 {offsets = [0, 128], sizes = [8, 128], strides = [1, 1]} : vector<8x384xf32> to vector<8x128xf32>
    %77 = vector.extract_strided_slice %74 {offsets = [0, 256], sizes = [8, 128], strides = [1, 1]} : vector<8x384xf32> to vector<8x128xf32>
    %78 = vector.extract_strided_slice %69 {offsets = [0, 384], sizes = [8, 128], strides = [1, 1]} : vector<8x512xf32> to vector<8x128xf32>
    %79 = arith.mulf %76, %59 : vector<8x128xf32>
    %80 = arith.mulf %75, %78 : vector<8x128xf32>
    %81 = arith.addf %79, %80 : vector<8x128xf32>
    %82 = math.tanh %81 : vector<8x128xf32>
    %83 = arith.mulf %77, %82 : vector<8x128xf32>
    %c3_i32 = arith.constant 3 : i32
    %c8_i32_29 = arith.constant 8 : i32
    %84 = arith.muli %c3_i32, %c8_i32_29 : i32
    %85 = tpu.assume_multiple %84, 8 : i32
    %86 = arith.index_cast %85 : i32 to index
    %c0_30 = arith.constant 0 : index
    %87 = vector.load %arg7[%86, %c0_30] : memref<64x512xf32, #tpu.memory_space<vmem>>, vector<8x512xf32>
    %c0_31 = arith.constant 0 : index
    %c0_32 = arith.constant 0 : index
    %88 = vector.load %arg2[%c0_31, %c0_32] : memref<128x512xf32, #tpu.memory_space<vmem>>, vector<128x512xf32>
    %cst_33 = arith.constant dense<0.000000e+00> : vector<8x512xf32>
    %89 = tpu.matmul %83, %88, %cst_33 {dimension_numbers = #tpu.dot_dimension_numbers<[1], [0], [0], [1], [0, 0, 1, 1], [], []>} : vector<8x128xf32>, vector<128x512xf32>, vector<8x512xf32> -> vector<8x512xf32>
    %90 = arith.addf %87, %89 : vector<8x512xf32>
    %91 = math.tanh %90 : vector<8x512xf32>
    %92 = vector.extract_strided_slice %91 {offsets = [0, 0], sizes = [8, 384], strides = [1, 1]} : vector<8x512xf32> to vector<8x384xf32>
    %cst_34 = arith.constant 5.000000e-01 : f32
    %93 = vector.broadcast %cst_34 : f32 to vector<8x384xf32>
    %94 = arith.mulf %93, %92 : vector<8x384xf32>
    %cst_35 = arith.constant 5.000000e-01 : f32
    %95 = vector.broadcast %cst_35 : f32 to vector<8x384xf32>
    %96 = arith.addf %94, %95 : vector<8x384xf32>
    %97 = vector.extract_strided_slice %96 {offsets = [0, 0], sizes = [8, 128], strides = [1, 1]} : vector<8x384xf32> to vector<8x128xf32>
    %98 = vector.extract_strided_slice %96 {offsets = [0, 128], sizes = [8, 128], strides = [1, 1]} : vector<8x384xf32> to vector<8x128xf32>
    %99 = vector.extract_strided_slice %96 {offsets = [0, 256], sizes = [8, 128], strides = [1, 1]} : vector<8x384xf32> to vector<8x128xf32>
    %100 = vector.extract_strided_slice %91 {offsets = [0, 384], sizes = [8, 128], strides = [1, 1]} : vector<8x512xf32> to vector<8x128xf32>
    %101 = arith.mulf %98, %81 : vector<8x128xf32>
    %102 = arith.mulf %97, %100 : vector<8x128xf32>
    %103 = arith.addf %101, %102 : vector<8x128xf32>
    %104 = math.tanh %103 : vector<8x128xf32>
    %105 = arith.mulf %99, %104 : vector<8x128xf32>
    %c4_i32 = arith.constant 4 : i32
    %c8_i32_36 = arith.constant 8 : i32
    %106 = arith.muli %c4_i32, %c8_i32_36 : i32
    %107 = tpu.assume_multiple %106, 8 : i32
    %108 = arith.index_cast %107 : i32 to index
    %c0_37 = arith.constant 0 : index
    %109 = vector.load %arg7[%108, %c0_37] : memref<64x512xf32, #tpu.memory_space<vmem>>, vector<8x512xf32>
    %c0_38 = arith.constant 0 : index
    %c0_39 = arith.constant 0 : index
    %110 = vector.load %arg2[%c0_38, %c0_39] : memref<128x512xf32, #tpu.memory_space<vmem>>, vector<128x512xf32>
    %cst_40 = arith.constant dense<0.000000e+00> : vector<8x512xf32>
    %111 = tpu.matmul %105, %110, %cst_40 {dimension_numbers = #tpu.dot_dimension_numbers<[1], [0], [0], [1], [0, 0, 1, 1], [], []>} : vector<8x128xf32>, vector<128x512xf32>, vector<8x512xf32> -> vector<8x512xf32>
    %112 = arith.addf %109, %111 : vector<8x512xf32>
    %113 = math.tanh %112 : vector<8x512xf32>
    %114 = vector.extract_strided_slice %113 {offsets = [0, 0], sizes = [8, 384], strides = [1, 1]} : vector<8x512xf32> to vector<8x384xf32>
    %cst_41 = arith.constant 5.000000e-01 : f32
    %115 = vector.broadcast %cst_41 : f32 to vector<8x384xf32>
    %116 = arith.mulf %115, %114 : vector<8x384xf32>
    %cst_42 = arith.constant 5.000000e-01 : f32
    %117 = vector.broadcast %cst_42 : f32 to vector<8x384xf32>
    %118 = arith.addf %116, %117 : vector<8x384xf32>
    %119 = vector.extract_strided_slice %118 {offsets = [0, 0], sizes = [8, 128], strides = [1, 1]} : vector<8x384xf32> to vector<8x128xf32>
    %120 = vector.extract_strided_slice %118 {offsets = [0, 128], sizes = [8, 128], strides = [1, 1]} : vector<8x384xf32> to vector<8x128xf32>
    %121 = vector.extract_strided_slice %118 {offsets = [0, 256], sizes = [8, 128], strides = [1, 1]} : vector<8x384xf32> to vector<8x128xf32>
    %122 = vector.extract_strided_slice %113 {offsets = [0, 384], sizes = [8, 128], strides = [1, 1]} : vector<8x512xf32> to vector<8x128xf32>
    %123 = arith.mulf %120, %103 : vector<8x128xf32>
    %124 = arith.mulf %119, %122 : vector<8x128xf32>
    %125 = arith.addf %123, %124 : vector<8x128xf32>
    %126 = math.tanh %125 : vector<8x128xf32>
    %127 = arith.mulf %121, %126 : vector<8x128xf32>
    %c5_i32 = arith.constant 5 : i32
    %c8_i32_43 = arith.constant 8 : i32
    %128 = arith.muli %c5_i32, %c8_i32_43 : i32
    %129 = tpu.assume_multiple %128, 8 : i32
    %130 = arith.index_cast %129 : i32 to index
    %c0_44 = arith.constant 0 : index
    %131 = vector.load %arg7[%130, %c0_44] : memref<64x512xf32, #tpu.memory_space<vmem>>, vector<8x512xf32>
    %c0_45 = arith.constant 0 : index
    %c0_46 = arith.constant 0 : index
    %132 = vector.load %arg2[%c0_45, %c0_46] : memref<128x512xf32, #tpu.memory_space<vmem>>, vector<128x512xf32>
    %cst_47 = arith.constant dense<0.000000e+00> : vector<8x512xf32>
    %133 = tpu.matmul %127, %132, %cst_47 {dimension_numbers = #tpu.dot_dimension_numbers<[1], [0], [0], [1], [0, 0, 1, 1], [], []>} : vector<8x128xf32>, vector<128x512xf32>, vector<8x512xf32> -> vector<8x512xf32>
    %134 = arith.addf %131, %133 : vector<8x512xf32>
    %135 = math.tanh %134 : vector<8x512xf32>
    %136 = vector.extract_strided_slice %135 {offsets = [0, 0], sizes = [8, 384], strides = [1, 1]} : vector<8x512xf32> to vector<8x384xf32>
    %cst_48 = arith.constant 5.000000e-01 : f32
    %137 = vector.broadcast %cst_48 : f32 to vector<8x384xf32>
    %138 = arith.mulf %137, %136 : vector<8x384xf32>
    %cst_49 = arith.constant 5.000000e-01 : f32
    %139 = vector.broadcast %cst_49 : f32 to vector<8x384xf32>
    %140 = arith.addf %138, %139 : vector<8x384xf32>
    %141 = vector.extract_strided_slice %140 {offsets = [0, 0], sizes = [8, 128], strides = [1, 1]} : vector<8x384xf32> to vector<8x128xf32>
    %142 = vector.extract_strided_slice %140 {offsets = [0, 128], sizes = [8, 128], strides = [1, 1]} : vector<8x384xf32> to vector<8x128xf32>
    %143 = vector.extract_strided_slice %140 {offsets = [0, 256], sizes = [8, 128], strides = [1, 1]} : vector<8x384xf32> to vector<8x128xf32>
    %144 = vector.extract_strided_slice %135 {offsets = [0, 384], sizes = [8, 128], strides = [1, 1]} : vector<8x512xf32> to vector<8x128xf32>
    %145 = arith.mulf %142, %125 : vector<8x128xf32>
    %146 = arith.mulf %141, %144 : vector<8x128xf32>
    %147 = arith.addf %145, %146 : vector<8x128xf32>
    %148 = math.tanh %147 : vector<8x128xf32>
    %149 = arith.mulf %143, %148 : vector<8x128xf32>
    %c6_i32 = arith.constant 6 : i32
    %c8_i32_50 = arith.constant 8 : i32
    %150 = arith.muli %c6_i32, %c8_i32_50 : i32
    %151 = tpu.assume_multiple %150, 8 : i32
    %152 = arith.index_cast %151 : i32 to index
    %c0_51 = arith.constant 0 : index
    %153 = vector.load %arg7[%152, %c0_51] : memref<64x512xf32, #tpu.memory_space<vmem>>, vector<8x512xf32>
    %c0_52 = arith.constant 0 : index
    %c0_53 = arith.constant 0 : index
    %154 = vector.load %arg2[%c0_52, %c0_53] : memref<128x512xf32, #tpu.memory_space<vmem>>, vector<128x512xf32>
    %cst_54 = arith.constant dense<0.000000e+00> : vector<8x512xf32>
    %155 = tpu.matmul %149, %154, %cst_54 {dimension_numbers = #tpu.dot_dimension_numbers<[1], [0], [0], [1], [0, 0, 1, 1], [], []>} : vector<8x128xf32>, vector<128x512xf32>, vector<8x512xf32> -> vector<8x512xf32>
    %156 = arith.addf %153, %155 : vector<8x512xf32>
    %157 = math.tanh %156 : vector<8x512xf32>
    %158 = vector.extract_strided_slice %157 {offsets = [0, 0], sizes = [8, 384], strides = [1, 1]} : vector<8x512xf32> to vector<8x384xf32>
    %cst_55 = arith.constant 5.000000e-01 : f32
    %159 = vector.broadcast %cst_55 : f32 to vector<8x384xf32>
    %160 = arith.mulf %159, %158 : vector<8x384xf32>
    %cst_56 = arith.constant 5.000000e-01 : f32
    %161 = vector.broadcast %cst_56 : f32 to vector<8x384xf32>
    %162 = arith.addf %160, %161 : vector<8x384xf32>
    %163 = vector.extract_strided_slice %162 {offsets = [0, 0], sizes = [8, 128], strides = [1, 1]} : vector<8x384xf32> to vector<8x128xf32>
    %164 = vector.extract_strided_slice %162 {offsets = [0, 128], sizes = [8, 128], strides = [1, 1]} : vector<8x384xf32> to vector<8x128xf32>
    %165 = vector.extract_strided_slice %162 {offsets = [0, 256], sizes = [8, 128], strides = [1, 1]} : vector<8x384xf32> to vector<8x128xf32>
    %166 = vector.extract_strided_slice %157 {offsets = [0, 384], sizes = [8, 128], strides = [1, 1]} : vector<8x512xf32> to vector<8x128xf32>
    %167 = arith.mulf %164, %147 : vector<8x128xf32>
    %168 = arith.mulf %163, %166 : vector<8x128xf32>
    %169 = arith.addf %167, %168 : vector<8x128xf32>
    %170 = math.tanh %169 : vector<8x128xf32>
    %171 = arith.mulf %165, %170 : vector<8x128xf32>
    %c7_i32 = arith.constant 7 : i32
    %c8_i32_57 = arith.constant 8 : i32
    %172 = arith.muli %c7_i32, %c8_i32_57 : i32
    %173 = tpu.assume_multiple %172, 8 : i32
    %174 = arith.index_cast %173 : i32 to index
    %c0_58 = arith.constant 0 : index
    %175 = vector.load %arg7[%174, %c0_58] : memref<64x512xf32, #tpu.memory_space<vmem>>, vector<8x512xf32>
    %c0_59 = arith.constant 0 : index
    %c0_60 = arith.constant 0 : index
    %176 = vector.load %arg2[%c0_59, %c0_60] : memref<128x512xf32, #tpu.memory_space<vmem>>, vector<128x512xf32>
    %cst_61 = arith.constant dense<0.000000e+00> : vector<8x512xf32>
    %177 = tpu.matmul %171, %176, %cst_61 {dimension_numbers = #tpu.dot_dimension_numbers<[1], [0], [0], [1], [0, 0, 1, 1], [], []>} : vector<8x128xf32>, vector<128x512xf32>, vector<8x512xf32> -> vector<8x512xf32>
    %178 = arith.addf %175, %177 : vector<8x512xf32>
    %179 = math.tanh %178 : vector<8x512xf32>
    %180 = vector.extract_strided_slice %179 {offsets = [0, 0], sizes = [8, 384], strides = [1, 1]} : vector<8x512xf32> to vector<8x384xf32>
    %cst_62 = arith.constant 5.000000e-01 : f32
    %181 = vector.broadcast %cst_62 : f32 to vector<8x384xf32>
    %182 = arith.mulf %181, %180 : vector<8x384xf32>
    %cst_63 = arith.constant 5.000000e-01 : f32
    %183 = vector.broadcast %cst_63 : f32 to vector<8x384xf32>
    %184 = arith.addf %182, %183 : vector<8x384xf32>
    %185 = vector.extract_strided_slice %184 {offsets = [0, 0], sizes = [8, 128], strides = [1, 1]} : vector<8x384xf32> to vector<8x128xf32>
    %186 = vector.extract_strided_slice %184 {offsets = [0, 128], sizes = [8, 128], strides = [1, 1]} : vector<8x384xf32> to vector<8x128xf32>
    %187 = vector.extract_strided_slice %184 {offsets = [0, 256], sizes = [8, 128], strides = [1, 1]} : vector<8x384xf32> to vector<8x128xf32>
    %188 = vector.extract_strided_slice %179 {offsets = [0, 384], sizes = [8, 128], strides = [1, 1]} : vector<8x512xf32> to vector<8x128xf32>
    %189 = arith.mulf %186, %169 : vector<8x128xf32>
    %190 = arith.mulf %185, %188 : vector<8x128xf32>
    %191 = arith.addf %189, %190 : vector<8x128xf32>
    %192 = math.tanh %191 : vector<8x128xf32>
    %193 = arith.mulf %187, %192 : vector<8x128xf32>
    %c8_i32_64 = arith.constant 8 : i32
    %c0_65 = arith.constant 0 : index
    %c0_66 = arith.constant 0 : index
    %194 = vector.load %arg4[%c0_65, %c0_66] : memref<1x128xf32, #tpu.memory_space<vmem>>, vector<1x128xf32>
    %195 = vector.broadcast %194 : vector<1x128xf32> to vector<8x128xf32>
    %196 = arith.mulf %193, %195 : vector<8x128xf32>
    %cst_67 = arith.constant dense<0.000000e+00> : vector<8xf32>
    %197 = vector.multi_reduction <add>, %196, %cst_67 [1] : vector<8x128xf32> to vector<8xf32>
    %198 = vector.shape_cast %197 : vector<8xf32> to vector<8x1xf32>
    %c0_68 = arith.constant 0 : index
    %c0_69 = arith.constant 0 : index
    %199 = vector.load %arg5[%c0_68, %c0_69] : memref<1x1xf32, #tpu.memory_space<vmem>>, vector<1x1xf32>
    %200 = vector.broadcast %199 : vector<1x1xf32> to vector<8x1xf32>
    %201 = arith.addf %198, %200 : vector<8x1xf32>
    %c0_70 = arith.constant 0 : index
    %c0_71 = arith.constant 0 : index
    %202 = vector.load %arg6[%c0_70, %c0_71] : memref<8x1xf32, #tpu.memory_space<vmem>>, vector<8x1xf32>
    tpu.vector_store %arg6[%c0_70, %c0_71], %201 {strides = array<i32>} : memref<8x1xf32, #tpu.memory_space<vmem>>, vector<8x1xf32>,
    return
  }
}

</mosaic_0001>

<bundles_post_ra>
// kernel: carbon_lstm_forward.1
= control target key start
LH: loop header
LB: loop body
LE: loop exit
PB: predicated region body
PF: predicated region fallthrough
CT: control target
= control target key end

     0   :  { %s3116_s0 = inlined_call_operand.vmem [shape: f32[64,2], index: 0, kind: input, shape index: {}]   ;;  %s3117_s1 = inlined_call_operand.vmem [shape: f32[2,512], index: 1, kind: input, shape index: {}]   ;;  %s3118_s2 = inlined_call_operand.hbm [shape: f32[128,512], index: 2, kind: input, shape index: {}]   ;;  %s3119_s3 = inlined_call_operand.vmem [shape: f32[1,512], index: 3, kind: input, shape index: {}]   ;;  %s3120_s4 = inlined_call_operand.vmem [shape: f32[1,128], index: 4, kind: input, shape index: {}]   ;;  %s3121_s5 = inlined_call_operand.<no memory space> [shape: f32[1,1], index: 5, kind: input, shape index: {}]   ;;  %s3122_s6 = inlined_call_operand.vmem [shape: f32[8,1], index: 6, kind: output, shape index: {}]  }
   0x1   :  { %v11_v0 = vstv %s3121_s5 }
   0x2   :  { %12 = vst [vmem:[#allocation3] sm:$0x1] %v11_v0 }
   0x3   :  { %13 = vsyncpa [#allocation5], 0  ;;  %s2416_s23 = smov [#allocation4]   ;;  %s2392_s27 = scalar_lea.hbm %s3118_s2, 8192 }
   0x4   :  { %s23_s24 = sshll.u32 %s2416_s23, 4  ;;  %p2393_p0 = scmp.ne.s32.totalorder %s3118_s2, %s2392_s27  ;;  %s24_s24 = int_to_ptr.vmem [resolvable:$true] %s23_s24 }
   0x5   :  { %p2396_p1 = scmp.lt.u32.totalorder %s2392_s27, %s3118_s2 }
   0x7   :  { %p2398_p2 = pnand %p2396_p1, %p2393_p0 }
   0x9   :  { %2401 = shalt.err (!%p2398_p2)
}
   0xa   :  { %s2402_s5 = scalar_lea.vmem %s24_s24, 8192  ;;  %p2407_p4 = scmp.lt.s32.totalorder %s24_s24, %s24_s24 }
   0xb   :  { %p2403_p3 = scmp.ne.s32.totalorder %s24_s24, %s2402_s5  ;;  %p2408_p5 = scmp.lt.s32.totalorder %s2402_s5, %s2402_s5 }
   0xd   :  { %p2409_p6 = por %p2408_p5, %p2407_p4 }
   0xf   :  { %p2410_p7 = pnand %p2409_p6, %p2403_p3 }
  0x11   :  { %2413 = shalt.err (!%p2410_p7)
}
  0x12   :  { %s2417_s8 = smov 512   ;;  %s2418_s9 = smov 32  }
  0x13   :  { %29 = dma.hbm_to_vmem [thread:$0]  %s3118_s2, 8192, %s24_s24, [#allocation5], %s2417_s8, %s2417_s8, %s2418_s9  }
  0x14   :  { %2414 = dma.done.wait [#allocation5], 8192  }
  0x15   :  { %2415 = vsyncadd [#allocation5], 4294959104  ;;  %v3123_v1 = vmov 0.0   ;;  %v2420_v2 = vmov 0   ;;  %v354_v3 = vld [vmem:[#allocation4 + $0x8] sm:$0xff]  ;;  %v356_v5 = vld [vmem:[#allocation4 + $0x18] sm:$0xff] }
  0x16   :  { %481 = vmatprep.mubr.f32.mxu0 %v3123_v1  ;;  %552 = vmatprep.mubr.f32.mxu1 %v3123_v1  ;;  %v358_v4 = vld [vmem:[#allocation4 + $0x28] sm:$0xff]  ;;  %v360_v7 = vld [vmem:[#allocation4 + $0x38] sm:$0xff]  ;;  %v353_v8 = vld [vmem:[#allocation4] sm:$0xff]  ;;  %vm1772_vm0 = vcmask 7168  }
  0x17   :  { %2309 = vset.pattern.permute.xlu1 %v2420_v2  ;;  %2307 = vset.pattern.permute.xlu0 %v2420_v2  ;;  %v2476_v6 = vpack.c.bf16 %v358_v4, %v354_v3  ;;  %v357_v9 = vld [vmem:[#allocation4 + $0x20] sm:$0xff]  ;;  %v2478_v10 = vpack.c.bf16 %v360_v7, %v356_v5  ;;  %v355_v12 = vld [vmem:[#allocation4 + $0x10] sm:$0xff]  ;;  %v362_v14 = vld [vmem:[#allocation4 + $0x48] sm:$0xff] }
  0x18   :  { %v2480_v11 = vpack.c.bf16 %v357_v9, %v353_v8  ;;  %v359_v13 = vld [vmem:[#allocation4 + $0x30] sm:$0xff]  ;;  %v366_v16 = vld [vmem:[#allocation4 + $0x68] sm:$0xff]  ;;  %v364_v17 = vld [vmem:[#allocation4 + $0x58] sm:$0xff] }
  0x19   :  { %3135 = vst [vmem:[#allocation7_spill] sm:$0xff] %v2476_v6  ;;  %3136 = vst [vmem:[#allocation8_spill] sm:$0xff] %v2478_v10  ;;  %1790 = vmatprep.subr.bf16.mxu0 %v2476_v6  ;;  %v2483_v15 = vpack.c.bf16 %v359_v13, %v355_v12  ;;  %v368_v18 = vld [vmem:[#allocation4 + $0x78] sm:$0xff]  ;;  %1822 = vmatprep.subr.bf16.mxu1 %v2478_v10  ;;  %v2487_v19 = vpack.c.bf16 %v366_v16, %v362_v14  ;;  %v361_v21 = vld [vmem:[#allocation4 + $0x40] sm:$0xff] }
  0x1a   :  { %1792 = vmatpush1.bf16.msra.mxu0 %v2480_v11  ;;  %v2489_v20 = vpack.c.bf16 %v368_v18, %v364_v17  ;;  %v365_v22 = vld [vmem:[#allocation4 + $0x60] sm:$0xff]  ;;  %v363_v23 = vld [vmem:[#allocation4 + $0x50] sm:$0xff]  ;;  %v370_v26 = vld [vmem:[#allocation4 + $0x88] sm:$0xff] }
  0x1b   :  { %1824 = vmatpush1.bf16.msra.mxu1 %v2483_v15  ;;  %v2492_v24 = vpack.c.bf16 %v365_v22, %v361_v21  ;;  %v367_v25 = vld [vmem:[#allocation4 + $0x70] sm:$0xff]  ;;  %v374_v27 = vld [vmem:[#allocation4 + $0xa8] sm:$0xff]  ;;  %1794 = vmatprep.subr.bf16.mxu0 %v2487_v19  ;;  %v372_v30 = vld [vmem:[#allocation4 + $0x98] sm:$0xff] }
  0x1c   :  { %1826 = vmatprep.subr.bf16.mxu1 %v2489_v20  ;;  %v2496_v28 = vpack.c.bf16 %v367_v25, %v363_v23  ;;  %v2498_v29 = vpack.c.bf16 %v374_v27, %v370_v26  ;;  %v376_v31 = vld [vmem:[#allocation4 + $0xb8] sm:$0xff]  ;;  %v369_v32 = vld [vmem:[#allocation4 + $0x80] sm:$0xff]  ;;  %v371_v35 = vld [vmem:[#allocation4 + $0x90] sm:$0xff] }
  0x1d   :  { %v2500_v33 = vpack.c.bf16 %v376_v31, %v372_v30  ;;  %v373_v34 = vld [vmem:[#allocation4 + $0xa0] sm:$0xff]  ;;  %v375_v36 = vld [vmem:[#allocation4 + $0xb0] sm:$0xff]  ;;  %v378_v38 = vld [vmem:[#allocation4 + $0xc8] sm:$0xff] }
  0x1e   :  { %1796 = vmatpush1.bf16.msra.mxu0 %v2492_v24  ;;  %v2503_v37 = vpack.c.bf16 %v373_v34, %v369_v32  ;;  %v382_v39 = vld [vmem:[#allocation4 + $0xe8] sm:$0xff]  ;;  %v380_v40 = vld [vmem:[#allocation4 + $0xd8] sm:$0xff]  ;;  %v2507_v41 = vpack.c.bf16 %v375_v36, %v371_v35  ;;  %v377_v44 = vld [vmem:[#allocation4 + $0xc0] sm:$0xff] }
  0x1f   :  { %1828 = vmatpush1.bf16.msra.mxu1 %v2496_v28  ;;  %1798 = vmatprep.subr.bf16.mxu0 %v2498_v29  ;;  %v2509_v42 = vpack.c.bf16 %v382_v39, %v378_v38  ;;  %v384_v43 = vld [vmem:[#allocation4 + $0xf8] sm:$0xff]  ;;  %v381_v45 = vld [vmem:[#allocation4 + $0xe0] sm:$0xff]  ;;  %v379_v47 = vld [vmem:[#allocation4 + $0xd0] sm:$0xff] }
  0x20   :  { %1830 = vmatprep.subr.bf16.mxu1 %v2500_v33  ;;  %v2512_v46 = vpack.c.bf16 %v384_v43, %v380_v40  ;;  %v383_v48 = vld [vmem:[#allocation4 + $0xf0] sm:$0xff]  ;;  %v386_v49 = vld [vmem:[#allocation4 + $0x108] sm:$0xff]  ;;  %v388_v51 = vld [vmem:[#allocation4 + $0x118] sm:$0xff]  ;;  %v2515_v53 = vpack.c.bf16 %v381_v45, %v377_v44 }
  0x21   :  { %v390_v50 = vld [vmem:[#allocation4 + $0x128] sm:$0xff]  ;;  %v392_v52 = vld [vmem:[#allocation4 + $0x138] sm:$0xff]  ;;  %v2519_v54 = vpack.c.bf16 %v383_v48, %v379_v47  ;;  %v385_v56 = vld [vmem:[#allocation4 + $0x100] sm:$0xff] }
  0x22   :  { %1800 = vmatpush1.bf16.msra.mxu0 %v2503_v37  ;;  %v2521_v55 = vpack.c.bf16 %v390_v50, %v386_v49  ;;  %v389_v57 = vld [vmem:[#allocation4 + $0x120] sm:$0xff]  ;;  %v387_v58 = vld [vmem:[#allocation4 + $0x110] sm:$0xff]  ;;  %v2524_v59 = vpack.c.bf16 %v392_v52, %v388_v51  ;;  %v394_v61 = vld [vmem:[#allocation4 + $0x148] sm:$0xff]  ;;  %v2421_v51 = vmov 1  }
  0x23   :  { %1832 = vmatpush1.bf16.msra.mxu1 %v2507_v41  ;;  %1802 = vmatprep.subr.bf16.mxu0 %v2509_v42  ;;  %v391_v60 = vld [vmem:[#allocation4 + $0x130] sm:$0xff]  ;;  %v398_v62 = vld [vmem:[#allocation4 + $0x168] sm:$0xff]  ;;  %v396_v63 = vld [vmem:[#allocation4 + $0x158] sm:$0xff]  ;;  %v2527_v3 = vpack.c.bf16 %v389_v57, %v385_v56 }
  0x24   :  { %1834 = vmatprep.subr.bf16.mxu1 %v2512_v46  ;;  %v400_v0 = vld [vmem:[#allocation4 + $0x178] sm:$0xff]  ;;  %v2531_v4 = vpack.c.bf16 %v391_v60, %v387_v58  ;;  %v2533_v5 = vpack.c.bf16 %v398_v62, %v394_v61  ;;  %v393_v7 = vld [vmem:[#allocation4 + $0x140] sm:$0xff]  ;;  %v395_v9 = vld [vmem:[#allocation4 + $0x150] sm:$0xff] }
  0x25   :  { %v397_v8 = vld [vmem:[#allocation4 + $0x160] sm:$0xff]  ;;  %v2536_v12 = vpack.c.bf16 %v400_v0, %v396_v63  ;;  %v399_v13 = vld [vmem:[#allocation4 + $0x170] sm:$0xff]  ;;  %v402_v14 = vld [vmem:[#allocation4 + $0x188] sm:$0xff]  ;;  %v89_v63 = vlaneseq }
  0x26   :  { %1804 = vmatpush1.bf16.msra.mxu0 %v2515_v53  ;;  %v406_v16 = vld [vmem:[#allocation4 + $0x1a8] sm:$0xff]  ;;  %v404_v17 = vld [vmem:[#allocation4 + $0x198] sm:$0xff]  ;;  %v2539_v21 = vpack.c.bf16 %v397_v8, %v393_v7  ;;  %v401_v22 = vld [vmem:[#allocation4 + $0x180] sm:$0xff]  ;;  %v2543_v25 = vpack.c.bf16 %v399_v13, %v395_v9 }
  0x27   :  { %1836 = vmatpush1.bf16.msra.mxu1 %v2519_v54  ;;  %1806 = vmatprep.subr.bf16.mxu0 %v2521_v55  ;;  %v408_v18 = vld [vmem:[#allocation4 + $0x1b8] sm:$0xff]  ;;  %v405_v23 = vld [vmem:[#allocation4 + $0x1a0] sm:$0xff]  ;;  %v2545_v26 = vpack.c.bf16 %v406_v16, %v402_v14  ;;  %v403_v27 = vld [vmem:[#allocation4 + $0x190] sm:$0xff]  ;;  %v90_v0 = vshrl.u32 %v89_v63, 7 }
  0x28   :  { %1838 = vmatprep.subr.bf16.mxu1 %v2524_v59  ;;  %v40_v30 = vld [vmem:[%s3116_s0 + $0x8] sm:$0xff]  ;;  %v39_v31 = vld [vmem:[%s3116_s0] sm:$0xff]  ;;  %v2554_v32 = vpack.c.bf16 %v408_v18, %v404_v17  ;;  %v407_v34 = vld [vmem:[#allocation4 + $0x1b0] sm:$0xff]  ;;  %v2557_v40 = vpack.c.bf16 %v405_v23, %v401_v22 }
  0x29   :  { %v410_v35 = vld [vmem:[#allocation4 + $0x1c8] sm:$0xff]  ;;  %55 = vperm.xlu1 %2309, %v40_v30   ;;  %v412_v38 = vld [vmem:[#allocation4 + $0x1d8] sm:$0xff]  ;;  %50 = vperm.xlu0 %2307, %v39_v31   ;;  %v2561_v43 = vpack.c.bf16 %v407_v34, %v403_v27  ;;  %v409_v45 = vld [vmem:[#allocation4 + $0x1c0] sm:$0xff]  ;;  %v91_v7 = vsub.s32 0, %v90_v0  ;;  %v2651_v22 = vsub.s32 1, %v90_v0  ;;  %v2653_v23 = vsub.s32 2, %v90_v0 }
  0x2a   :  { %1808 = vmatpush1.bf16.msra.mxu0 %v2527_v3  ;;  %v414_v36 = vld [vmem:[#allocation4 + $0x1e8] sm:$0xff]  ;;  %v416_v39 = vld [vmem:[#allocation4 + $0x1f8] sm:$0xff]  ;;  %v413_v47 = vld [vmem:[#allocation4 + $0x1e0] sm:$0xff]  ;;  %v2655_v27 = vsub.s32 3, %v90_v0 }
  0x2b   :  { %1840 = vmatpush1.bf16.msra.mxu1 %v2531_v4  ;;  %1810 = vmatprep.subr.bf16.mxu0 %v2533_v5  ;;  %v2563_v44 = vpack.c.bf16 %v414_v36, %v410_v35  ;;  %v2566_v48 = vpack.c.bf16 %v416_v39, %v412_v38  ;;  %v411_v49 = vld [vmem:[#allocation4 + $0x1d0] sm:$0xff]  ;;  %v2569_v52 = vpack.c.bf16 %v413_v47, %v409_v45  ;;  %v44_v60 = vld [vmem:[%s3116_s0 + $0x28] sm:$0xff]  ;;  %v47_v8 = vld [vmem:[%s3117_s1] ss:$2 sm:$0xf] }
  0x2c   :  { %1842 = vmatprep.subr.bf16.mxu1 %v2536_v12  ;;  %v415_v50 = vld [vmem:[#allocation4 + $0x1f0] sm:$0xff]  ;;  %v1786_v14 = vld [vmem:[%s3117_s1 + $0x1] ss:$2 sm:$0xf]  ;;  %v2645_v16 = vrot.slane %v47_v8, %v91_v7  ;;  %v2672_v39 = vrot.slane %v47_v8, %v2651_v22  ;;  %v2675_v45 = vrot.slane %v47_v8, %v2653_v23  ;;  %v2678_v47 = vrot.slane %v47_v8, %v2655_v27 }
  0x2d   :  { %2310 = vset.pattern.permute.xlu1 %v2421_v51  ;;  %2308 = vset.pattern.permute.xlu0 %v2421_v51  ;;  %v2573_v56 = vpack.c.bf16 %v415_v50, %v411_v49  ;;  %v41_v57 = vld [vmem:[%s3116_s0 + $0x10] sm:$0xff]  ;;  %v42_v58 = vld [vmem:[%s3116_s0 + $0x18] sm:$0xff]  ;;  %v2649_v18 = vrot.slane %v1786_v14, %v91_v7  ;;  %v2681_v49 = vrot.slane %v1786_v14, %v2651_v22 }
  0x2e   :  { %1812 = vmatpush1.bf16.msra.mxu0 %v2539_v21  ;;  %148 = vperm.xlu1 %2310, %v40_v30   ;;  %v45_v61 = vld [vmem:[%s3116_s0 + $0x30] sm:$0xff]  ;;  %v46_v62 = vld [vmem:[%s3116_s0 + $0x38] sm:$0xff]  ;;  %v2684_v50 = vrot.slane %v1786_v14, %v2653_v23  ;;  %v2687_v51 = vrot.slane %v1786_v14, %v2655_v27 }
  0x2f   :  { %1844 = vmatpush1.bf16.msra.mxu1 %v2543_v25  ;;  %1814 = vmatprep.subr.bf16.mxu0 %v2545_v26  ;;  %3137 = vst [vmem:[#allocation9_spill] sm:$0xff] %v2573_v56 }
  0x30   :  { %1846 = vmatprep.subr.bf16.mxu1 %v2554_v32  ;;  %144 = vperm.xlu0 %2308, %v39_v31   ;;  %v2662_v31 = vld [vmem:[%s3119_s3] sm:$0xf] }
  0x31   :  { %v2669_v36 = vrot.slane %v2662_v31, %v91_v7 }
  0x32   :  { %1816 = vmatpush1.bf16.msra.mxu0 %v2557_v40  ;;  %2311 = vset.pattern.permute.xlu1 %v2420_v2  ;;  %v43_v2 = vld [vmem:[%s3116_s0 + $0x20] sm:$0xff] }
  0x33   :  { %1848 = vmatpush1.bf16.msra.mxu1 %v2561_v43  ;;  %1818 = vmatprep.subr.bf16.mxu0 %v2563_v44 }
  0x34   :  { %1850 = vmatprep.subr.bf16.mxu1 %v2566_v48  ;;  %60 = vperm.xlu1 %2311, %v41_v57  }
  0x35   :  { %152 = vperm.xlu0 %2308, %v41_v57  }
  0x36   :  { %1820 = vmatpush1.bf16.msra.mxu0 %v2569_v52 }
  0x37   :  { %1852 = vmatpush1.bf16.msra.mxu1 %v2573_v56  ;;  %1854 = vmatprep.subr.bf16.mxu0 %v2476_v6 }
  0x38   :  { %1886 = vmatprep.subr.bf16.mxu1 %v2478_v10  ;;  %65 = vperm.xlu1 %2311, %v42_v58  }
  0x39   :  { %482 = vmatmul.mubr.f32.vlgmr.msra.gmra.mrb[0].mxu0 %v3123_v1  ;;  %156 = vperm.xlu0 %2308, %v42_v58  }
  0x3a   :  { %553 = vmatmul.mubr.f32.vlgmr.msra.gmra.mrb[0].mxu1 %v3123_v1  ;;  %1856 = vmatpush1.bf16.msra.mxu0 %v2480_v11 }
  0x3b   :  { %1888 = vmatpush1.bf16.msra.mxu1 %v2483_v15  ;;  %1858 = vmatprep.subr.bf16.mxu0 %v2487_v19 }
  0x3c   :  { %1890 = vmatprep.subr.bf16.mxu1 %v2489_v20  ;;  %649 = vmatprep.mubr.f32.mxu0 %v3123_v1 }
  0x3d   :  { %70 = vperm.xlu1 %2311, %v43_v2   ;;  %720 = vmatprep.mubr.f32.mxu1 %v3123_v1 }
  0x3e   :  { %160 = vperm.xlu0 %2308, %v43_v2   ;;  %1860 = vmatpush1.bf16.msra.mxu0 %v2492_v24 }
  0x3f   :  { %1892 = vmatpush1.bf16.msra.mxu1 %v2496_v28  ;;  %1862 = vmatprep.subr.bf16.mxu0 %v2498_v29 }
  0x40   :  { %1894 = vmatprep.subr.bf16.mxu1 %v2500_v33 }
  0x41   :  { %75 = vperm.xlu1 %2311, %v44_v60  }
  0x42   :  { %164 = vperm.xlu0 %2308, %v44_v60   ;;  %1864 = vmatpush1.bf16.msra.mxu0 %v2503_v37 }
  0x43   :  { %1896 = vmatpush1.bf16.msra.mxu1 %v2507_v41  ;;  %1866 = vmatprep.subr.bf16.mxu0 %v2509_v42 }
  0x44   :  { %1898 = vmatprep.subr.bf16.mxu1 %v2512_v46 }
  0x45   :  { %80 = vperm.xlu1 %2311, %v45_v61  }
  0x46   :  { %168 = vperm.xlu0 %2308, %v45_v61   ;;  %1868 = vmatpush1.bf16.msra.mxu0 %v2515_v53 }
  0x47   :  { %1900 = vmatpush1.bf16.msra.mxu1 %v2519_v54  ;;  %1870 = vmatprep.subr.bf16.mxu0 %v2521_v55 }
  0x48   :  { %1902 = vmatprep.subr.bf16.mxu1 %v2524_v59 }
  0x49   :  { %85 = vperm.xlu1 %2311, %v46_v62  }
  0x4a   :  { %172 = vperm.xlu0 %2308, %v46_v62   ;;  %1872 = vmatpush1.bf16.msra.mxu0 %v2527_v3 }
  0x4b   :  { %1904 = vmatpush1.bf16.msra.mxu1 %v2531_v4  ;;  %1874 = vmatprep.subr.bf16.mxu0 %v2533_v5 }
  0x4c   :  { %1906 = vmatprep.subr.bf16.mxu1 %v2536_v12 }
  0x4e   :  { %1876 = vmatpush1.bf16.msra.mxu0 %v2539_v21 }
  0x4f   :  { %1908 = vmatpush1.bf16.msra.mxu1 %v2543_v25  ;;  %1878 = vmatprep.subr.bf16.mxu0 %v2545_v26 }
  0x50   :  { %1910 = vmatprep.subr.bf16.mxu1 %v2554_v32 }
  0x52   :  { %1880 = vmatpush1.bf16.msra.mxu0 %v2557_v40 }
  0x53   :  { %1912 = vmatpush1.bf16.msra.mxu1 %v2561_v43  ;;  %1882 = vmatprep.subr.bf16.mxu0 %v2563_v44 }
  0x54   :  { %1914 = vmatprep.subr.bf16.mxu1 %v2566_v48 }
  0x56   :  { %1884 = vmatpush1.bf16.msra.mxu0 %v2569_v52 }
  0x57   :  { %1916 = vmatpush1.bf16.msra.mxu1 %v2573_v56  ;;  %1918 = vmatprep.subr.bf16.mxu0 %v2476_v6 }
  0x58   :  { %1950 = vmatprep.subr.bf16.mxu1 %v2478_v10 }
  0xa8   :  { %v2638_v9 = vpop.permute.xlu1 %55  ;;  %v2640_v13 = vpop.permute.xlu0 %50 }
  0xa9   :  { %3138 = vst [vmem:[#allocation10_spill] sm:$0xff] %v2638_v9  ;;  %v113_v17 = vmul.f32 %v2645_v16, %v2638_v9 }
  0xad   :  { %v2657_v30 = vpop.permute.xlu1 %148 }
  0xae   :  { %3139 = vst [vmem:[#allocation11_spill] sm:$0xff] %v2657_v30  ;;  %v200_v34 = vmul.f32 %v2649_v18, %v2657_v30 }
  0xaf   :  { %v2666_v35 = vpop.permute.xlu0 %144 }
  0xb0   :  { %v232_v38 = vadd.f32 %v200_v34, %v113_v17 }
  0xb2   :  { %v2690_v58 = vadd.f32 %v2669_v36, %v232_v38 }
  0xb3   :  { %v61_v57 = vpop.permute.xlu1 %60 }
  0xb4   :  { %3140 = vst [vmem:[#allocation12_spill] sm:$0xff] %v2690_v58  ;;  %v117_v2 = vmul.f32 %v2645_v16, %v61_v57  ;;  %v118_v60 = vmul.f32 %v2672_v39, %v61_v57  ;;  %v119_v61 = vmul.f32 %v2675_v45, %v61_v57  ;;  %v120_v62 = vmul.f32 %v2678_v47, %v61_v57  ;;  %v153_v63 = vpop.permute.xlu0 %152 }
  0xb5   :  { %v204_v0 = vmul.f32 %v2649_v18, %v153_v63  ;;  %v205_v7 = vmul.f32 %v2681_v49, %v153_v63  ;;  %v206_v8 = vmul.f32 %v2684_v50, %v153_v63  ;;  %v207_v14 = vmul.f32 %v2687_v51, %v153_v63 }
  0xb7   :  { %v66_v17 = vpop.permute.xlu1 %65  ;;  %v236_v34 = vadd.f32 %v204_v0, %v117_v2  ;;  %v2700_v38 = vadd.f32 %v206_v8, %v119_v61  ;;  %v2702_v1 = vadd.f32 %v205_v7, %v118_v60  ;;  %v2704_v58 = vadd.f32 %v207_v14, %v120_v62 }
  0xb8   :  { %v121_v30 = vmul.f32 %v2645_v16, %v66_v17  ;;  %v122_v57 = vmul.f32 %v2672_v39, %v66_v17  ;;  %v123_v9 = vmul.f32 %v2675_v45, %v66_v17  ;;  %v124_v10 = vmul.f32 %v2678_v47, %v66_v17  ;;  %v157_v6 = vpop.permute.xlu0 %156 }
  0xb9   :  { %3141 = vst [vmem:[#allocation13_spill] sm:$0xff] %v2700_v38  ;;  %3142 = vst [vmem:[#allocation14_spill] sm:$0xff] %v2702_v1  ;;  %v208_v56 = vmul.f32 %v2649_v18, %v157_v6  ;;  %v209_v63 = vmul.f32 %v2681_v49, %v157_v6  ;;  %v210_v2 = vmul.f32 %v2684_v50, %v157_v6 }
  0xba   :  { %3143 = vst [vmem:[#allocation15_spill] sm:$0xff] %v2704_v58  ;;  %v211_v60 = vmul.f32 %v2687_v51, %v157_v6  ;;  %v2715_v61 = vadd.f32 %v2669_v36, %v236_v34 }
  0xbb   :  { %v240_v0 = vadd.f32 %v208_v56, %v121_v30  ;;  %v2717_v7 = vadd.f32 %v210_v2, %v123_v9  ;;  %v2719_v8 = vadd.f32 %v209_v63, %v122_v57 }
  0xbc   :  { %3144 = vst [vmem:[#allocation16_spill] sm:$0xff] %v2715_v61  ;;  %v71_v62 = vpop.permute.xlu1 %70  ;;  %v2721_v14 = vadd.f32 %v211_v60, %v124_v10 }
  0xbd   :  { %3145 = vst [vmem:[#allocation17_spill] sm:$0xff] %v2717_v7  ;;  %3146 = vst [vmem:[#allocation18_spill] sm:$0xff] %v2719_v8  ;;  %v125_v17 = vmul.f32 %v2645_v16, %v71_v62  ;;  %v126_v58 = vmul.f32 %v2672_v39, %v71_v62  ;;  %v127_v1 = vmul.f32 %v2675_v45, %v71_v62  ;;  %v161_v6 = vpop.permute.xlu0 %160 }
  0xbe   :  { %3147 = vst [vmem:[#allocation19_spill] sm:$0xff] %v2721_v14  ;;  %v128_v38 = vmul.f32 %v2678_v47, %v71_v62  ;;  %v212_v34 = vmul.f32 %v2649_v18, %v161_v6  ;;  %v213_v61 = vmul.f32 %v2681_v49, %v161_v6  ;;  %v214_v56 = vmul.f32 %v2684_v50, %v161_v6 }
  0xbf   :  { %v215_v9 = vmul.f32 %v2687_v51, %v161_v6  ;;  %v2732_v10 = vadd.f32 %v2669_v36, %v240_v0 }
  0xc0   :  { %v76_v30 = vpop.permute.xlu1 %75  ;;  %v244_v57 = vadd.f32 %v212_v34, %v125_v17  ;;  %v2734_v63 = vadd.f32 %v214_v56, %v127_v1  ;;  %v2736_v2 = vadd.f32 %v213_v61, %v126_v58 }
  0xc1   :  { %3148 = vst [vmem:[#allocation20_spill] sm:$0xff] %v2732_v10  ;;  %v2738_v60 = vadd.f32 %v215_v9, %v128_v38  ;;  %v129_v62 = vmul.f32 %v2645_v16, %v76_v30  ;;  %v130_v14 = vmul.f32 %v2672_v39, %v76_v30  ;;  %v131_v8 = vmul.f32 %v2675_v45, %v76_v30  ;;  %v165_v6 = vpop.permute.xlu0 %164 }
  0xc2   :  { %3149 = vst [vmem:[#allocation21_spill] sm:$0xff] %v2734_v63  ;;  %3150 = vst [vmem:[#allocation22_spill] sm:$0xff] %v2736_v2  ;;  %v132_v7 = vmul.f32 %v2678_v47, %v76_v30  ;;  %v216_v0 = vmul.f32 %v2649_v18, %v165_v6  ;;  %v217_v10 = vmul.f32 %v2681_v49, %v165_v6 }
  0xc3   :  { %3151 = vst [vmem:[#allocation23_spill] sm:$0xff] %v2738_v60  ;;  %v218_v1 = vmul.f32 %v2684_v50, %v165_v6  ;;  %v219_v58 = vmul.f32 %v2687_v51, %v165_v6  ;;  %v2749_v38 = vadd.f32 %v2669_v36, %v244_v57 }
  0xc4   :  { %v81_v61 = vpop.permute.xlu1 %80  ;;  %v248_v17 = vadd.f32 %v216_v0, %v129_v62  ;;  %v2753_v56 = vadd.f32 %v217_v10, %v130_v14 }
  0xc5   :  { %3152 = vst [vmem:[#allocation24_spill] sm:$0xff] %v2749_v38  ;;  %v2751_v34 = vadd.f32 %v218_v1, %v131_v8  ;;  %v2755_v9 = vadd.f32 %v219_v58, %v132_v7  ;;  %v133_v30 = vmul.f32 %v2645_v16, %v81_v61  ;;  %v134_v60 = vmul.f32 %v2672_v39, %v81_v61  ;;  %v169_v6 = vpop.permute.xlu0 %168 }
  0xc6   :  { %3154 = vst [vmem:[#allocation26_spill] sm:$0xff] %v2753_v56  ;;  %v135_v2 = vmul.f32 %v2675_v45, %v81_v61  ;;  %v136_v63 = vmul.f32 %v2678_v47, %v81_v61  ;;  %v220_v57 = vmul.f32 %v2649_v18, %v169_v6  ;;  %v221_v38 = vmul.f32 %v2681_v49, %v169_v6 }
  0xc7   :  { %3153 = vst [vmem:[#allocation25_spill] sm:$0xff] %v2751_v34  ;;  %3155 = vst [vmem:[#allocation27_spill] sm:$0xff] %v2755_v9  ;;  %v222_v8 = vmul.f32 %v2684_v50, %v169_v6  ;;  %v223_v14 = vmul.f32 %v2687_v51, %v169_v6  ;;  %v2766_v7 = vadd.f32 %v2669_v36, %v248_v17 }
  0xc8   :  { %v86_v10 = vpop.permute.xlu1 %85  ;;  %v252_v62 = vadd.f32 %v220_v57, %v133_v30  ;;  %v2770_v1 = vadd.f32 %v221_v38, %v134_v60 }
  0xc9   :  { %3156 = vst [vmem:[#allocation28_spill] sm:$0xff] %v2766_v7  ;;  %v2768_v0 = vadd.f32 %v222_v8, %v135_v2  ;;  %v2772_v58 = vadd.f32 %v223_v14, %v136_v63  ;;  %v137_v61 = vmul.f32 %v2645_v16, %v86_v10  ;;  %v138_v9 = vmul.f32 %v2672_v39, %v86_v10  ;;  %v173_v6 = vpop.permute.xlu0 %172 }
  0xca   :  { %v139_v56 = vmul.f32 %v2675_v45, %v86_v10  ;;  %v140_v34 = vmul.f32 %v2678_v47, %v86_v10  ;;  %v224_v17 = vmul.f32 %v2649_v18, %v173_v6  ;;  %v225_v7 = vmul.f32 %v2681_v49, %v173_v6 }
  0xcb   :  { %3157 = vst [vmem:[#allocation29_spill] sm:$0xff] %v2772_v58  ;;  %v226_v2 = vmul.f32 %v2684_v50, %v173_v6  ;;  %v227_v60 = vmul.f32 %v2687_v51, %v173_v6  ;;  %v2783_v63 = vadd.f32 %v2669_v36, %v252_v62  ;;  %v109_v10 = vmul.f32 %v2645_v16, %v2640_v13 }
  0xcc   :  { %v256_v38 = vadd.f32 %v224_v17, %v137_v61  ;;  %v2787_v57 = vadd.f32 %v225_v7, %v138_v9  ;;  %v196_v58 = vmul.f32 %v2649_v18, %v2666_v35  ;;  %v110_v62 = vmul.f32 %v2672_v39, %v2640_v13 }
  0xcd   :  { %v2785_v30 = vadd.f32 %v226_v2, %v139_v56  ;;  %v2789_v8 = vadd.f32 %v227_v60, %v140_v34  ;;  %v197_v56 = vmul.f32 %v2681_v49, %v2666_v35  ;;  %v112_v9 = vmul.f32 %v2678_v47, %v2640_v13 }
  0xce   :  { %3158 = vst [vmem:[#allocation30_spill] sm:$0xff] %v2787_v57  ;;  %v2792_v14 = vadd.f32 %v2669_v36, %v256_v38  ;;  %v199_v34 = vmul.f32 %v2687_v51, %v2666_v35  ;;  %v228_v7 = vadd.f32 %v196_v58, %v109_v10  ;;  %v2808_v16 = vrot.slane %v2662_v31, %v2651_v22 }
  0xcf   :  { %3159 = vst [vmem:[#allocation31_spill] sm:$0xff] %v2789_v8  ;;  %v229_v61 = vadd.f32 %v197_v56, %v110_v62  ;;  %v2812_v18 = vrot.slane %v2662_v31, %v2655_v27  ;;  %v111_v10 = vmul.f32 %v2675_v45, %v2640_v13  ;;  %v198_v22 = vmul.f32 %v2684_v50, %v2666_v35 }
  0xd0   :  { %3160 = vst [vmem:[#allocation32_spill] sm:$0xff] %v2792_v14  ;;  %v231_v6 = vadd.f32 %v199_v34, %v112_v9  ;;  %v282_v17 = vadd.f32 %v2669_v36, %v228_v7  ;;  %v2823_v9 = vrot.slane %v2662_v31, %v2653_v23 }
  0xd1   :  { %v283_v60 = vadd.f32 %v2808_v16, %v229_v61  ;;  %v230_v36 = vadd.f32 %v198_v22, %v111_v10 }
  0xd2   :  { %v285_v58 = vadd.f32 %v2812_v18, %v231_v6 }
  0xd3   :  { %v284_v34 = vadd.f32 %v2823_v9, %v230_v36  ;;  %v3164_v36 = vld [vmem:[#allocation8_spill] sm:$0xff] }
 0x10c   :  { %v483_v2 = vpop.f32.mrb[0].mxu0 }
 0x10d   :  { %v559_v38 = vadd.f32 %v483_v2, %v282_v17  ;;  %v554_v14 = vpop.f32.mrb[0].mxu1  ;;  %v485_v8 = vpop.f32.mrb[1].mxu0 }
 0x10e   :  { %v560_v62 = vadd.f32 %v485_v8, %v283_v60  ;;  %v556_v56 = vpop.f32.mrb[1].mxu1  ;;  %v561_v7 = vadd.f32 %v554_v14, %v284_v34  ;;  %v3161_v14 = vmov 0.0   ;;  %v3165_v34 = vld [vmem:[#allocation10_spill] sm:$0xff] }
 0x10f   :  { %2312 = vtanh.f32 %v559_v38  ;;  %v562_v27 = vadd.f32 %v556_v56, %v285_v58  ;;  %v3162_v56 = vld [vmem:[#allocation9_spill] sm:$0xff] }
 0x110   :  { %2314 = vtanh.f32 %v560_v62 }
 0x111   :  { %2316 = vtanh.f32 %v562_v27  ;;  %v3163_v27 = vld [vmem:[#allocation7_spill] sm:$0xff] }
 0x112   :  { %2318 = vtanh.f32 %v561_v7  ;;  %v114_v7 = vmul.f32 %v2672_v39, %v3165_v34 }
 0x119   :  { %v2313_v61 = vpop.eup %2312 }
 0x11a   :  { %v567_v6 = vmul.f32 0.5, %v2313_v61  ;;  %v2315_v13 = vpop.eup %2314  ;;  %v115_v61 = vmul.f32 %v2675_v45, %v3165_v34 }
 0x11b   :  { %v568_v35 = vmul.f32 0.5, %v2315_v13  ;;  %v2317_v8 = vpop.eup %2316  ;;  %v3166_v13 = vld [vmem:[#allocation11_spill] sm:$0xff] }
 0x11c   :  { %v570_v17 = vadd.f32 0.5, %v567_v6  ;;  %v2319_v23 = vpop.eup %2318  ;;  %v116_v6 = vmul.f32 %v2678_v47, %v3165_v34 }
 0x11d   :  { %v571_v2 = vadd.f32 0.5, %v568_v35  ;;  %v569_v31 = vmul.f32 0.5, %v2319_v23  ;;  %v202_v35 = vmul.f32 %v2684_v50, %v3166_v13 }
 0x11e   :  { %v574_v60 = vmul.f32 %v2317_v8, %v570_v17  ;;  %v201_v17 = vmul.f32 %v2681_v49, %v3166_v13  ;;  %v203_v8 = vmul.f32 %v2687_v51, %v3166_v13 }
 0x11f   :  { %v573_v38 = vmul.f32 0.0, %v571_v2  ;;  %v572_v10 = vadd.f32 0.5, %v569_v31  ;;  %v234_v2 = vadd.f32 %v202_v35, %v115_v61 }
 0x121   :  { %v2826_v58 = vadd.f32 %v574_v60, %v573_v38  ;;  %v233_v60 = vadd.f32 %v201_v17, %v114_v7  ;;  %v235_v38 = vadd.f32 %v203_v8, %v116_v6  ;;  %v288_v39 = vadd.f32 %v2823_v9, %v234_v2 }
 0x123   :  { %2320 = vtanh.f32 %v2826_v58  ;;  %v287_v45 = vadd.f32 %v2808_v16, %v233_v60  ;;  %v289_v47 = vadd.f32 %v2812_v18, %v235_v38 }
 0x12d   :  { %v2321_v22 = vpop.eup %2320 }
 0x12e   :  { %v577_v62 = vmul.f32 %v2321_v22, %v572_v10  ;;  %v3167_v10 = vld [vmem:[#allocation12_spill] sm:$0xff] }
 0x130   :  { %650 = vmatmul.mubr.f32.vlgmr.msra.gmra.mrb[2].mxu0 %v577_v62  ;;  %721 = vmatmul.mubr.f32.vlgmr.msra.gmra.mrb[2].mxu1 %v577_v62 }
 0x131   :  { %1920 = vmatpush1.bf16.msra.mxu0 %v2480_v11  ;;  %1952 = vmatpush1.bf16.msra.mxu1 %v2483_v15 }
 0x132   :  { %1922 = vmatprep.subr.bf16.mxu0 %v2487_v19  ;;  %1954 = vmatprep.subr.bf16.mxu1 %v2489_v20 }
 0x133   :  { %817 = vmatprep.mubr.f32.mxu0 %v3161_v14  ;;  %888 = vmatprep.mubr.f32.mxu1 %v3161_v14 }
 0x135   :  { %1924 = vmatpush1.bf16.msra.mxu0 %v2492_v24  ;;  %1956 = vmatpush1.bf16.msra.mxu1 %v2496_v28 }
 0x136   :  { %1926 = vmatprep.subr.bf16.mxu0 %v2498_v29  ;;  %1958 = vmatprep.subr.bf16.mxu1 %v2500_v33 }
 0x139   :  { %1928 = vmatpush1.bf16.msra.mxu0 %v2503_v37  ;;  %1960 = vmatpush1.bf16.msra.mxu1 %v2507_v41 }
 0x13a   :  { %1930 = vmatprep.subr.bf16.mxu0 %v2509_v42  ;;  %1962 = vmatprep.subr.bf16.mxu1 %v2512_v46 }
 0x13d   :  { %1932 = vmatpush1.bf16.msra.mxu0 %v2515_v53  ;;  %1964 = vmatpush1.bf16.msra.mxu1 %v2519_v54 }
 0x13e   :  { %1934 = vmatprep.subr.bf16.mxu0 %v2521_v55  ;;  %1966 = vmatprep.subr.bf16.mxu1 %v2524_v59 }
 0x141   :  { %1936 = vmatpush1.bf16.msra.mxu0 %v2527_v3  ;;  %1968 = vmatpush1.bf16.msra.mxu1 %v2531_v4 }
 0x142   :  { %1938 = vmatprep.subr.bf16.mxu0 %v2533_v5  ;;  %1970 = vmatprep.subr.bf16.mxu1 %v2536_v12 }
 0x145   :  { %1940 = vmatpush1.bf16.msra.mxu0 %v2539_v21  ;;  %1972 = vmatpush1.bf16.msra.mxu1 %v2543_v25 }
 0x146   :  { %1942 = vmatprep.subr.bf16.mxu0 %v2545_v26  ;;  %1974 = vmatprep.subr.bf16.mxu1 %v2554_v32 }
 0x149   :  { %1944 = vmatpush1.bf16.msra.mxu0 %v2557_v40  ;;  %1976 = vmatpush1.bf16.msra.mxu1 %v2561_v43 }
 0x14a   :  { %1946 = vmatprep.subr.bf16.mxu0 %v2563_v44  ;;  %1978 = vmatprep.subr.bf16.mxu1 %v2566_v48 }
 0x14d   :  { %1948 = vmatpush1.bf16.msra.mxu0 %v2569_v52  ;;  %1980 = vmatpush1.bf16.msra.mxu1 %v3162_v56 }
 0x14e   :  { %1982 = vmatprep.subr.bf16.mxu0 %v3163_v27  ;;  %2014 = vmatprep.subr.bf16.mxu1 %v3164_v36 }
 0x203   :  { %v651_v23 = vpop.f32.mrb[2].mxu0  ;;  %v722_v31 = vpop.f32.mrb[2].mxu1 }
 0x204   :  { %v727_v22 = vadd.f32 %v651_v23, %v3167_v10  ;;  %v729_v49 = vadd.f32 %v722_v31, %v288_v39  ;;  %v653_v62 = vpop.f32.mrb[3].mxu0  ;;  %v724_v34 = vpop.f32.mrb[3].mxu1 }
 0x205   :  { %v728_v50 = vadd.f32 %v653_v62, %v287_v45  ;;  %v730_v57 = vadd.f32 %v724_v34, %v289_v47  ;;  %v3170_v62 = vld [vmem:[#allocation15_spill] sm:$0xff] }
 0x206   :  { %2322 = vtanh.f32 %v727_v22  ;;  %v3169_v22 = vld [vmem:[#allocation14_spill] sm:$0xff]  ;;  %v293_v34 = vadd.f32 %v2812_v18, %v3170_v62 }
 0x207   :  { %2324 = vtanh.f32 %v728_v50  ;;  %v3171_v50 = vld [vmem:[#allocation16_spill] sm:$0xff] }
 0x208   :  { %2326 = vtanh.f32 %v730_v57 }
 0x209   :  { %2328 = vtanh.f32 %v729_v49  ;;  %v291_v49 = vadd.f32 %v2808_v16, %v3169_v22 }
 0x210   :  { %v2323_v51 = vpop.eup %2322 }
 0x211   :  { %v735_v7 = vmul.f32 0.5, %v2323_v51  ;;  %v2325_v61 = vpop.eup %2324 }
 0x212   :  { %v736_v13 = vmul.f32 0.5, %v2325_v61  ;;  %v2327_v17 = vpop.eup %2326 }
 0x213   :  { %v738_v6 = vadd.f32 0.5, %v735_v7  ;;  %v2329_v38 = vpop.eup %2328 }
 0x214   :  { %v739_v35 = vadd.f32 0.5, %v736_v13  ;;  %v737_v39 = vmul.f32 0.5, %v2329_v38 }
 0x215   :  { %v742_v8 = vmul.f32 %v2327_v17, %v738_v6 }
 0x216   :  { %v741_v2 = vmul.f32 %v739_v35, %v2826_v58  ;;  %v740_v23 = vadd.f32 0.5, %v737_v39  ;;  %v3168_v58 = vld [vmem:[#allocation13_spill] sm:$0xff] }
 0x217   :  { %v292_v45 = vadd.f32 %v2823_v9, %v3168_v58 }
 0x218   :  { %v2880_v60 = vadd.f32 %v742_v8, %v741_v2 }
 0x21a   :  { %2330 = vtanh.f32 %v2880_v60 }
 0x224   :  { %v2331_v31 = vpop.eup %2330 }
 0x225   :  { %v745_v57 = vmul.f32 %v2331_v31, %v740_v23 }
 0x227   :  { %818 = vmatmul.mubr.f32.vlgmr.msra.gmra.mrb[4].mxu0 %v745_v57  ;;  %889 = vmatmul.mubr.f32.vlgmr.msra.gmra.mrb[4].mxu1 %v745_v57 }
 0x228   :  { %1984 = vmatpush1.bf16.msra.mxu0 %v2480_v11  ;;  %2016 = vmatpush1.bf16.msra.mxu1 %v2483_v15 }
 0x229   :  { %1986 = vmatprep.subr.bf16.mxu0 %v2487_v19  ;;  %2018 = vmatprep.subr.bf16.mxu1 %v2489_v20 }
 0x22a   :  { %985 = vmatprep.mubr.f32.mxu0 %v3161_v14  ;;  %1056 = vmatprep.mubr.f32.mxu1 %v3161_v14 }
 0x22c   :  { %1988 = vmatpush1.bf16.msra.mxu0 %v2492_v24  ;;  %2020 = vmatpush1.bf16.msra.mxu1 %v2496_v28 }
 0x22d   :  { %1990 = vmatprep.subr.bf16.mxu0 %v2498_v29  ;;  %2022 = vmatprep.subr.bf16.mxu1 %v2500_v33 }
 0x230   :  { %1992 = vmatpush1.bf16.msra.mxu0 %v2503_v37  ;;  %2024 = vmatpush1.bf16.msra.mxu1 %v2507_v41 }
 0x231   :  { %1994 = vmatprep.subr.bf16.mxu0 %v2509_v42  ;;  %2026 = vmatprep.subr.bf16.mxu1 %v2512_v46 }
 0x234   :  { %1996 = vmatpush1.bf16.msra.mxu0 %v2515_v53  ;;  %2028 = vmatpush1.bf16.msra.mxu1 %v2519_v54 }
 0x235   :  { %1998 = vmatprep.subr.bf16.mxu0 %v2521_v55  ;;  %2030 = vmatprep.subr.bf16.mxu1 %v2524_v59 }
 0x238   :  { %2000 = vmatpush1.bf16.msra.mxu0 %v2527_v3  ;;  %2032 = vmatpush1.bf16.msra.mxu1 %v2531_v4 }
 0x239   :  { %2002 = vmatprep.subr.bf16.mxu0 %v2533_v5  ;;  %2034 = vmatprep.subr.bf16.mxu1 %v2536_v12 }
 0x23c   :  { %2004 = vmatpush1.bf16.msra.mxu0 %v2539_v21  ;;  %2036 = vmatpush1.bf16.msra.mxu1 %v2543_v25 }
 0x23d   :  { %2006 = vmatprep.subr.bf16.mxu0 %v2545_v26  ;;  %2038 = vmatprep.subr.bf16.mxu1 %v2554_v32 }
 0x240   :  { %2008 = vmatpush1.bf16.msra.mxu0 %v2557_v40  ;;  %2040 = vmatpush1.bf16.msra.mxu1 %v2561_v43 }
 0x241   :  { %2010 = vmatprep.subr.bf16.mxu0 %v2563_v44  ;;  %2042 = vmatprep.subr.bf16.mxu1 %v2566_v48 }
 0x244   :  { %2012 = vmatpush1.bf16.msra.mxu0 %v2569_v52  ;;  %2044 = vmatpush1.bf16.msra.mxu1 %v3162_v56 }
 0x245   :  { %2046 = vmatprep.subr.bf16.mxu0 %v3163_v27  ;;  %2078 = vmatprep.subr.bf16.mxu1 %v3164_v36 }
 0x2fa   :  { %v819_v47 = vpop.f32.mrb[4].mxu0  ;;  %v890_v10 = vpop.f32.mrb[4].mxu1 }
 0x2fb   :  { %v895_v51 = vadd.f32 %v819_v47, %v3171_v50  ;;  %v897_v7 = vadd.f32 %v890_v10, %v292_v45  ;;  %v821_v61 = vpop.f32.mrb[5].mxu0  ;;  %v892_v6 = vpop.f32.mrb[5].mxu1 }
 0x2fc   :  { %v896_v13 = vadd.f32 %v821_v61, %v291_v49  ;;  %v898_v17 = vadd.f32 %v892_v6, %v293_v34  ;;  %v3174_v6 = vld [vmem:[#allocation19_spill] sm:$0xff] }
 0x2fd   :  { %2332 = vtanh.f32 %v895_v51 }
 0x2fe   :  { %2334 = vtanh.f32 %v896_v13  ;;  %v297_v13 = vadd.f32 %v2812_v18, %v3174_v6 }
 0x2ff   :  { %2336 = vtanh.f32 %v898_v17  ;;  %v3175_v17 = vld [vmem:[#allocation20_spill] sm:$0xff] }
 0x300   :  { %2338 = vtanh.f32 %v897_v7  ;;  %v3173_v7 = vld [vmem:[#allocation18_spill] sm:$0xff] }
 0x301   :  { %v295_v61 = vadd.f32 %v2808_v16, %v3173_v7 }
 0x307   :  { %v2333_v35 = vpop.eup %2332 }
 0x308   :  { %v903_v8 = vmul.f32 0.5, %v2333_v35  ;;  %v2335_v2 = vpop.eup %2334 }
 0x309   :  { %v904_v39 = vmul.f32 0.5, %v2335_v2  ;;  %v2337_v23 = vpop.eup %2336 }
 0x30a   :  { %v906_v38 = vadd.f32 0.5, %v903_v8  ;;  %v2339_v45 = vpop.eup %2338 }
 0x30b   :  { %v907_v31 = vadd.f32 0.5, %v904_v39  ;;  %v905_v10 = vmul.f32 0.5, %v2339_v45 }
 0x30c   :  { %v910_v57 = vmul.f32 %v2337_v23, %v906_v38 }
 0x30d   :  { %v909_v58 = vmul.f32 %v907_v31, %v2880_v60  ;;  %v908_v22 = vadd.f32 0.5, %v905_v10  ;;  %v3172_v60 = vld [vmem:[#allocation17_spill] sm:$0xff] }
 0x30e   :  { %v296_v34 = vadd.f32 %v2823_v9, %v3172_v60 }
 0x30f   :  { %v2925_v47 = vadd.f32 %v910_v57, %v909_v58 }
 0x311   :  { %2340 = vtanh.f32 %v2925_v47 }
 0x31b   :  { %v2341_v49 = vpop.eup %2340 }
 0x31c   :  { %v913_v62 = vmul.f32 %v2341_v49, %v908_v22 }
 0x31e   :  { %986 = vmatmul.mubr.f32.vlgmr.msra.gmra.mrb[6].mxu0 %v913_v62  ;;  %1057 = vmatmul.mubr.f32.vlgmr.msra.gmra.mrb[6].mxu1 %v913_v62 }
 0x31f   :  { %2048 = vmatpush1.bf16.msra.mxu0 %v2480_v11  ;;  %2080 = vmatpush1.bf16.msra.mxu1 %v2483_v15 }
 0x320   :  { %2050 = vmatprep.subr.bf16.mxu0 %v2487_v19  ;;  %2082 = vmatprep.subr.bf16.mxu1 %v2489_v20 }
 0x321   :  { %1153 = vmatprep.mubr.f32.mxu0 %v3161_v14  ;;  %1224 = vmatprep.mubr.f32.mxu1 %v3161_v14 }
 0x323   :  { %2052 = vmatpush1.bf16.msra.mxu0 %v2492_v24  ;;  %2084 = vmatpush1.bf16.msra.mxu1 %v2496_v28 }
 0x324   :  { %2054 = vmatprep.subr.bf16.mxu0 %v2498_v29  ;;  %2086 = vmatprep.subr.bf16.mxu1 %v2500_v33 }
 0x327   :  { %2056 = vmatpush1.bf16.msra.mxu0 %v2503_v37  ;;  %2088 = vmatpush1.bf16.msra.mxu1 %v2507_v41 }
 0x328   :  { %2058 = vmatprep.subr.bf16.mxu0 %v2509_v42  ;;  %2090 = vmatprep.subr.bf16.mxu1 %v2512_v46 }
 0x32b   :  { %2060 = vmatpush1.bf16.msra.mxu0 %v2515_v53  ;;  %2092 = vmatpush1.bf16.msra.mxu1 %v2519_v54 }
 0x32c   :  { %2062 = vmatprep.subr.bf16.mxu0 %v2521_v55  ;;  %2094 = vmatprep.subr.bf16.mxu1 %v2524_v59 }
 0x32f   :  { %2064 = vmatpush1.bf16.msra.mxu0 %v2527_v3  ;;  %2096 = vmatpush1.bf16.msra.mxu1 %v2531_v4 }
 0x330   :  { %2066 = vmatprep.subr.bf16.mxu0 %v2533_v5  ;;  %2098 = vmatprep.subr.bf16.mxu1 %v2536_v12 }
 0x333   :  { %2068 = vmatpush1.bf16.msra.mxu0 %v2539_v21  ;;  %2100 = vmatpush1.bf16.msra.mxu1 %v2543_v25 }
 0x334   :  { %2070 = vmatprep.subr.bf16.mxu0 %v2545_v26  ;;  %2102 = vmatprep.subr.bf16.mxu1 %v2554_v32 }
 0x337   :  { %2072 = vmatpush1.bf16.msra.mxu0 %v2557_v40  ;;  %2104 = vmatpush1.bf16.msra.mxu1 %v2561_v43 }
 0x338   :  { %2074 = vmatprep.subr.bf16.mxu0 %v2563_v44  ;;  %2106 = vmatprep.subr.bf16.mxu1 %v2566_v48 }
 0x33b   :  { %2076 = vmatpush1.bf16.msra.mxu0 %v2569_v52  ;;  %2108 = vmatpush1.bf16.msra.mxu1 %v3162_v56 }
 0x33c   :  { %2110 = vmatprep.subr.bf16.mxu0 %v3163_v27  ;;  %2142 = vmatprep.subr.bf16.mxu1 %v3164_v36 }
 0x3f1   :  { %v987_v50 = vpop.f32.mrb[6].mxu0  ;;  %v1058_v51 = vpop.f32.mrb[6].mxu1 }
 0x3f2   :  { %v1063_v35 = vadd.f32 %v987_v50, %v3175_v17  ;;  %v1065_v8 = vadd.f32 %v1058_v51, %v296_v34  ;;  %v989_v2 = vpop.f32.mrb[7].mxu0  ;;  %v1060_v38 = vpop.f32.mrb[7].mxu1 }
 0x3f3   :  { %v1064_v39 = vadd.f32 %v989_v2, %v295_v61  ;;  %v1066_v23 = vadd.f32 %v1060_v38, %v297_v13  ;;  %v3178_v38 = vld [vmem:[#allocation23_spill] sm:$0xff] }
 0x3f4   :  { %2342 = vtanh.f32 %v1063_v35 }
 0x3f5   :  { %2344 = vtanh.f32 %v1064_v39  ;;  %v301_v39 = vadd.f32 %v2812_v18, %v3178_v38 }
 0x3f6   :  { %2346 = vtanh.f32 %v1066_v23  ;;  %v3179_v23 = vld [vmem:[#allocation24_spill] sm:$0xff] }
 0x3f7   :  { %2348 = vtanh.f32 %v1065_v8  ;;  %v3177_v8 = vld [vmem:[#allocation22_spill] sm:$0xff] }
 0x3f8   :  { %v299_v2 = vadd.f32 %v2808_v16, %v3177_v8 }
 0x3fe   :  { %v2343_v31 = vpop.eup %2342 }
 0x3ff   :  { %v1071_v57 = vmul.f32 0.5, %v2343_v31  ;;  %v2345_v58 = vpop.eup %2344 }
 0x400   :  { %v1072_v10 = vmul.f32 0.5, %v2345_v58  ;;  %v2347_v22 = vpop.eup %2346 }
 0x401   :  { %v1074_v45 = vadd.f32 0.5, %v1071_v57  ;;  %v2349_v34 = vpop.eup %2348 }
 0x402   :  { %v1075_v49 = vadd.f32 0.5, %v1072_v10  ;;  %v1073_v51 = vmul.f32 0.5, %v2349_v34 }
 0x403   :  { %v1078_v62 = vmul.f32 %v2347_v22, %v1074_v45 }
 0x404   :  { %v1077_v60 = vmul.f32 %v1075_v49, %v2925_v47  ;;  %v1076_v7 = vadd.f32 0.5, %v1073_v51  ;;  %v3176_v47 = vld [vmem:[#allocation21_spill] sm:$0xff] }
 0x405   :  { %v300_v13 = vadd.f32 %v2823_v9, %v3176_v47 }
 0x406   :  { %v2970_v50 = vadd.f32 %v1078_v62, %v1077_v60 }
 0x408   :  { %2350 = vtanh.f32 %v2970_v50 }
 0x412   :  { %v2351_v61 = vpop.eup %2350 }
 0x413   :  { %v1081_v6 = vmul.f32 %v2351_v61, %v1076_v7 }
 0x415   :  { %1154 = vmatmul.mubr.f32.vlgmr.msra.gmra.mrb[8].mxu0 %v1081_v6  ;;  %1225 = vmatmul.mubr.f32.vlgmr.msra.gmra.mrb[8].mxu1 %v1081_v6 }
 0x416   :  { %2112 = vmatpush1.bf16.msra.mxu0 %v2480_v11  ;;  %2144 = vmatpush1.bf16.msra.mxu1 %v2483_v15 }
 0x417   :  { %2114 = vmatprep.subr.bf16.mxu0 %v2487_v19  ;;  %2146 = vmatprep.subr.bf16.mxu1 %v2489_v20 }
 0x418   :  { %1321 = vmatprep.mubr.f32.mxu0 %v3161_v14  ;;  %1392 = vmatprep.mubr.f32.mxu1 %v3161_v14 }
 0x41a   :  { %2116 = vmatpush1.bf16.msra.mxu0 %v2492_v24  ;;  %2148 = vmatpush1.bf16.msra.mxu1 %v2496_v28 }
 0x41b   :  { %2118 = vmatprep.subr.bf16.mxu0 %v2498_v29  ;;  %2150 = vmatprep.subr.bf16.mxu1 %v2500_v33 }
 0x41e   :  { %2120 = vmatpush1.bf16.msra.mxu0 %v2503_v37  ;;  %2152 = vmatpush1.bf16.msra.mxu1 %v2507_v41 }
 0x41f   :  { %2122 = vmatprep.subr.bf16.mxu0 %v2509_v42  ;;  %2154 = vmatprep.subr.bf16.mxu1 %v2512_v46 }
 0x422   :  { %2124 = vmatpush1.bf16.msra.mxu0 %v2515_v53  ;;  %2156 = vmatpush1.bf16.msra.mxu1 %v2519_v54 }
 0x423   :  { %2126 = vmatprep.subr.bf16.mxu0 %v2521_v55  ;;  %2158 = vmatprep.subr.bf16.mxu1 %v2524_v59 }
 0x426   :  { %2128 = vmatpush1.bf16.msra.mxu0 %v2527_v3  ;;  %2160 = vmatpush1.bf16.msra.mxu1 %v2531_v4 }
 0x427   :  { %2130 = vmatprep.subr.bf16.mxu0 %v2533_v5  ;;  %2162 = vmatprep.subr.bf16.mxu1 %v2536_v12 }
 0x42a   :  { %2132 = vmatpush1.bf16.msra.mxu0 %v2539_v21  ;;  %2164 = vmatpush1.bf16.msra.mxu1 %v2543_v25 }
 0x42b   :  { %2134 = vmatprep.subr.bf16.mxu0 %v2545_v26  ;;  %2166 = vmatprep.subr.bf16.mxu1 %v2554_v32 }
 0x42e   :  { %2136 = vmatpush1.bf16.msra.mxu0 %v2557_v40  ;;  %2168 = vmatpush1.bf16.msra.mxu1 %v2561_v43 }
 0x42f   :  { %2138 = vmatprep.subr.bf16.mxu0 %v2563_v44  ;;  %2170 = vmatprep.subr.bf16.mxu1 %v2566_v48 }
 0x432   :  { %2140 = vmatpush1.bf16.msra.mxu0 %v2569_v52  ;;  %2172 = vmatpush1.bf16.msra.mxu1 %v3162_v56 }
 0x433   :  { %2174 = vmatprep.subr.bf16.mxu0 %v3163_v27  ;;  %2206 = vmatprep.subr.bf16.mxu1 %v3164_v36 }
 0x4e8   :  { %v1155_v17 = vpop.f32.mrb[8].mxu0  ;;  %v1226_v35 = vpop.f32.mrb[8].mxu1 }
 0x4e9   :  { %v1231_v31 = vadd.f32 %v1155_v17, %v3179_v23  ;;  %v1233_v57 = vadd.f32 %v1226_v35, %v300_v13  ;;  %v1157_v58 = vpop.f32.mrb[9].mxu0  ;;  %v1228_v45 = vpop.f32.mrb[9].mxu1 }
 0x4ea   :  { %v1232_v10 = vadd.f32 %v1157_v58, %v299_v2  ;;  %v1234_v22 = vadd.f32 %v1228_v45, %v301_v39  ;;  %v3182_v45 = vld [vmem:[#allocation27_spill] sm:$0xff] }
 0x4eb   :  { %2352 = vtanh.f32 %v1231_v31 }
 0x4ec   :  { %2354 = vtanh.f32 %v1232_v10  ;;  %v305_v10 = vadd.f32 %v2812_v18, %v3182_v45 }
 0x4ed   :  { %2356 = vtanh.f32 %v1234_v22  ;;  %v3183_v22 = vld [vmem:[#allocation28_spill] sm:$0xff] }
 0x4ee   :  { %2358 = vtanh.f32 %v1233_v57  ;;  %v3181_v57 = vld [vmem:[#allocation26_spill] sm:$0xff] }
 0x4ef   :  { %v303_v58 = vadd.f32 %v2808_v16, %v3181_v57 }
 0x4f5   :  { %v2353_v49 = vpop.eup %2352 }
 0x4f6   :  { %v1239_v62 = vmul.f32 0.5, %v2353_v49  ;;  %v2355_v60 = vpop.eup %2354 }
 0x4f7   :  { %v1240_v51 = vmul.f32 0.5, %v2355_v60  ;;  %v2357_v7 = vpop.eup %2356 }
 0x4f8   :  { %v1242_v34 = vadd.f32 0.5, %v1239_v62  ;;  %v2359_v13 = vpop.eup %2358 }
 0x4f9   :  { %v1243_v61 = vadd.f32 0.5, %v1240_v51  ;;  %v1241_v35 = vmul.f32 0.5, %v2359_v13 }
 0x4fa   :  { %v1246_v6 = vmul.f32 %v2357_v7, %v1242_v34 }
 0x4fb   :  { %v1245_v47 = vmul.f32 %v1243_v61, %v2970_v50  ;;  %v1244_v8 = vadd.f32 0.5, %v1241_v35  ;;  %v3180_v50 = vld [vmem:[#allocation25_spill] sm:$0xff] }
 0x4fc   :  { %v304_v39 = vadd.f32 %v2823_v9, %v3180_v50 }
 0x4fd   :  { %v3015_v17 = vadd.f32 %v1246_v6, %v1245_v47 }
 0x4ff   :  { %2360 = vtanh.f32 %v3015_v17 }
 0x509   :  { %v2361_v2 = vpop.eup %2360 }
 0x50a   :  { %v1249_v38 = vmul.f32 %v2361_v2, %v1244_v8 }
 0x50c   :  { %1322 = vmatmul.mubr.f32.vlgmr.msra.gmra.mrb[10].mxu0 %v1249_v38  ;;  %1393 = vmatmul.mubr.f32.vlgmr.msra.gmra.mrb[10].mxu1 %v1249_v38 }
 0x50d   :  { %2176 = vmatpush1.bf16.msra.mxu0 %v2480_v11  ;;  %2208 = vmatpush1.bf16.msra.mxu1 %v2483_v15 }
 0x50e   :  { %2178 = vmatprep.subr.bf16.mxu0 %v2487_v19  ;;  %2210 = vmatprep.subr.bf16.mxu1 %v2489_v20 }
 0x50f   :  { %1489 = vmatprep.mubr.f32.mxu0 %v3161_v14  ;;  %1560 = vmatprep.mubr.f32.mxu1 %v3161_v14 }
 0x511   :  { %2180 = vmatpush1.bf16.msra.mxu0 %v2492_v24  ;;  %2212 = vmatpush1.bf16.msra.mxu1 %v2496_v28 }
 0x512   :  { %2182 = vmatprep.subr.bf16.mxu0 %v2498_v29  ;;  %2214 = vmatprep.subr.bf16.mxu1 %v2500_v33 }
 0x515   :  { %2184 = vmatpush1.bf16.msra.mxu0 %v2503_v37  ;;  %2216 = vmatpush1.bf16.msra.mxu1 %v2507_v41 }
 0x516   :  { %2186 = vmatprep.subr.bf16.mxu0 %v2509_v42  ;;  %2218 = vmatprep.subr.bf16.mxu1 %v2512_v46 }
 0x519   :  { %2188 = vmatpush1.bf16.msra.mxu0 %v2515_v53  ;;  %2220 = vmatpush1.bf16.msra.mxu1 %v2519_v54 }
 0x51a   :  { %2190 = vmatprep.subr.bf16.mxu0 %v2521_v55  ;;  %2222 = vmatprep.subr.bf16.mxu1 %v2524_v59 }
 0x51d   :  { %2192 = vmatpush1.bf16.msra.mxu0 %v2527_v3  ;;  %2224 = vmatpush1.bf16.msra.mxu1 %v2531_v4 }
 0x51e   :  { %2194 = vmatprep.subr.bf16.mxu0 %v2533_v5  ;;  %2226 = vmatprep.subr.bf16.mxu1 %v2536_v12 }
 0x521   :  { %2196 = vmatpush1.bf16.msra.mxu0 %v2539_v21  ;;  %2228 = vmatpush1.bf16.msra.mxu1 %v2543_v25 }
 0x522   :  { %2198 = vmatprep.subr.bf16.mxu0 %v2545_v26  ;;  %2230 = vmatprep.subr.bf16.mxu1 %v2554_v32 }
 0x525   :  { %2200 = vmatpush1.bf16.msra.mxu0 %v2557_v40  ;;  %2232 = vmatpush1.bf16.msra.mxu1 %v2561_v43 }
 0x526   :  { %2202 = vmatprep.subr.bf16.mxu0 %v2563_v44  ;;  %2234 = vmatprep.subr.bf16.mxu1 %v2566_v48 }
 0x529   :  { %2204 = vmatpush1.bf16.msra.mxu0 %v2569_v52  ;;  %2236 = vmatpush1.bf16.msra.mxu1 %v3162_v56 }
 0x52a   :  { %2238 = vmatprep.subr.bf16.mxu0 %v3163_v27  ;;  %2270 = vmatprep.subr.bf16.mxu1 %v3164_v36 }
 0x5df   :  { %v1323_v23 = vpop.f32.mrb[10].mxu0  ;;  %v1394_v31 = vpop.f32.mrb[10].mxu1 }
 0x5e0   :  { %v1399_v49 = vadd.f32 %v1323_v23, %v3183_v22  ;;  %v1401_v62 = vadd.f32 %v1394_v31, %v304_v39  ;;  %v1325_v60 = vpop.f32.mrb[11].mxu0  ;;  %v1396_v34 = vpop.f32.mrb[11].mxu1 }
 0x5e1   :  { %v1400_v51 = vadd.f32 %v1325_v60, %v303_v58  ;;  %v1402_v27 = vadd.f32 %v1396_v34, %v305_v10 }
 0x5e2   :  { %2362 = vtanh.f32 %v1399_v49 }
 0x5e3   :  { %2364 = vtanh.f32 %v1400_v51 }
 0x5e4   :  { %2366 = vtanh.f32 %v1402_v27 }
 0x5e5   :  { %2368 = vtanh.f32 %v1401_v62 }
 0x5ec   :  { %v2363_v36 = vpop.eup %2362 }
 0x5ed   :  { %v1407_v7 = vmul.f32 0.5, %v2363_v36  ;;  %v2365_v61 = vpop.eup %2364 }
 0x5ee   :  { %v1408_v47 = vmul.f32 0.5, %v2365_v61  ;;  %v2367_v13 = vpop.eup %2366 }
 0x5ef   :  { %v1410_v6 = vadd.f32 0.5, %v1407_v7  ;;  %v2369_v50 = vpop.eup %2368 }
 0x5f0   :  { %v1411_v35 = vadd.f32 0.5, %v1408_v47  ;;  %v1409_v39 = vmul.f32 0.5, %v2369_v50 }
 0x5f1   :  { %v1414_v8 = vmul.f32 %v2367_v13, %v1410_v6 }
 0x5f2   :  { %v1413_v2 = vmul.f32 %v1411_v35, %v3015_v17  ;;  %v1412_v23 = vadd.f32 0.5, %v1409_v39  ;;  %v3187_v17 = vld [vmem:[#allocation32_spill] sm:$0xff]  ;;  %v1787_v35 = vld [vmem:[%s3120_s4] ss:$0 sm:$0xff] }
 0x5f4   :  { %v3060_v38 = vadd.f32 %v1414_v8, %v1413_v2 }
 0x5f6   :  { %2370 = vtanh.f32 %v3060_v38 }
 0x600   :  { %v2371_v31 = vpop.eup %2370 }
 0x601   :  { %v1417_v57 = vmul.f32 %v2371_v31, %v1412_v23 }
 0x603   :  { %1490 = vmatmul.mubr.f32.vlgmr.msra.gmra.mrb[12].mxu0 %v1417_v57  ;;  %1561 = vmatmul.mubr.f32.vlgmr.msra.gmra.mrb[12].mxu1 %v1417_v57 }
 0x604   :  { %2240 = vmatpush1.bf16.msra.mxu0 %v2480_v11  ;;  %2272 = vmatpush1.bf16.msra.mxu1 %v2483_v15  ;;  %v308_v11 = vadd.f32 %v2823_v9, %v2768_v0 }
 0x605   :  { %2242 = vmatprep.subr.bf16.mxu0 %v2487_v19  ;;  %2274 = vmatprep.subr.bf16.mxu1 %v2489_v20  ;;  %v307_v20 = vadd.f32 %v2808_v16, %v2770_v1  ;;  %v3185_v1 = vld [vmem:[#allocation30_spill] sm:$0xff] }
 0x606   :  { %1657 = vmatprep.mubr.f32.mxu0 %v3161_v14  ;;  %1728 = vmatprep.mubr.f32.mxu1 %v3161_v14  ;;  %v3186_v14 = vld [vmem:[#allocation31_spill] sm:$0xff] }
 0x608   :  { %2244 = vmatpush1.bf16.msra.mxu0 %v2492_v24  ;;  %2276 = vmatpush1.bf16.msra.mxu1 %v2496_v28  ;;  %v3184_v24 = vld [vmem:[#allocation29_spill] sm:$0xff] }
 0x609   :  { %2246 = vmatprep.subr.bf16.mxu0 %v2498_v29  ;;  %2278 = vmatprep.subr.bf16.mxu1 %v2500_v33  ;;  %v309_v28 = vadd.f32 %v2812_v18, %v3184_v24 }
 0x60c   :  { %2248 = vmatpush1.bf16.msra.mxu0 %v2503_v37  ;;  %2280 = vmatpush1.bf16.msra.mxu1 %v2507_v41 }
 0x60d   :  { %2250 = vmatprep.subr.bf16.mxu0 %v2509_v42  ;;  %2282 = vmatprep.subr.bf16.mxu1 %v2512_v46 }
 0x610   :  { %2252 = vmatpush1.bf16.msra.mxu0 %v2515_v53  ;;  %2284 = vmatpush1.bf16.msra.mxu1 %v2519_v54 }
 0x611   :  { %2254 = vmatprep.subr.bf16.mxu0 %v2521_v55  ;;  %2286 = vmatprep.subr.bf16.mxu1 %v2524_v59 }
 0x614   :  { %2256 = vmatpush1.bf16.msra.mxu0 %v2527_v3  ;;  %2288 = vmatpush1.bf16.msra.mxu1 %v2531_v4 }
 0x615   :  { %2258 = vmatprep.subr.bf16.mxu0 %v2533_v5  ;;  %2290 = vmatprep.subr.bf16.mxu1 %v2536_v12 }
 0x618   :  { %2260 = vmatpush1.bf16.msra.mxu0 %v2539_v21  ;;  %2292 = vmatpush1.bf16.msra.mxu1 %v2543_v25 }
 0x619   :  { %2262 = vmatprep.subr.bf16.mxu0 %v2545_v26  ;;  %2294 = vmatprep.subr.bf16.mxu1 %v2554_v32 }
 0x61c   :  { %2264 = vmatpush1.bf16.msra.mxu0 %v2557_v40  ;;  %2296 = vmatpush1.bf16.msra.mxu1 %v2561_v43 }
 0x61d   :  { %2266 = vmatprep.subr.bf16.mxu0 %v2563_v44  ;;  %2298 = vmatprep.subr.bf16.mxu1 %v2566_v48  ;;  %v312_v48 = vadd.f32 %v2823_v9, %v2785_v30 }
 0x620   :  { %2268 = vmatpush1.bf16.msra.mxu0 %v2569_v52  ;;  %2300 = vmatpush1.bf16.msra.mxu1 %v3162_v56  ;;  %v313_v56 = vadd.f32 %v2812_v18, %v3186_v14 }
 0x6d6   :  { %v1491_v15 = vpop.f32.mrb[12].mxu0  ;;  %v1562_v19 = vpop.f32.mrb[12].mxu1 }
 0x6d7   :  { %v1567_v29 = vadd.f32 %v1491_v15, %v2783_v63  ;;  %v1569_v33 = vadd.f32 %v1562_v19, %v308_v11  ;;  %v1493_v37 = vpop.f32.mrb[13].mxu0  ;;  %v1564_v41 = vpop.f32.mrb[13].mxu1  ;;  %v311_v63 = vadd.f32 %v2808_v16, %v3185_v1 }
 0x6d8   :  { %v1568_v42 = vadd.f32 %v1493_v37, %v307_v20  ;;  %v1570_v46 = vadd.f32 %v1564_v41, %v309_v28 }
 0x6d9   :  { %2372 = vtanh.f32 %v1567_v29 }
 0x6da   :  { %2374 = vtanh.f32 %v1568_v42 }
 0x6db   :  { %2376 = vtanh.f32 %v1570_v46 }
 0x6dc   :  { %2378 = vtanh.f32 %v1569_v33 }
 0x6e3   :  { %v2373_v53 = vpop.eup %2372 }
 0x6e4   :  { %v1575_v54 = vmul.f32 0.5, %v2373_v53  ;;  %v2375_v55 = vpop.eup %2374 }
 0x6e5   :  { %v1576_v3 = vmul.f32 0.5, %v2375_v55  ;;  %v2377_v4 = vpop.eup %2376 }
 0x6e6   :  { %v1578_v59 = vadd.f32 0.5, %v1575_v54  ;;  %v2379_v26 = vpop.eup %2378 }
 0x6e7   :  { %v1579_v5 = vadd.f32 0.5, %v1576_v3  ;;  %v1577_v32 = vmul.f32 0.5, %v2379_v26 }
 0x6e8   :  { %v1582_v12 = vmul.f32 %v2377_v4, %v1578_v59 }
 0x6e9   :  { %v1581_v21 = vmul.f32 %v1579_v5, %v3060_v38  ;;  %v1580_v40 = vadd.f32 0.5, %v1577_v32  ;;  %v1788_v38 = vld [vmem:[#allocation3] ss:$0 sm:$0xff] }
 0x6eb   :  { %v1583_v25 = vadd.f32 %v1582_v12, %v1581_v21 }
 0x6ed   :  { %2380 = vtanh.f32 %v1583_v25 }
 0x6f7   :  { %v2381_v43 = vpop.eup %2380 }
 0x6f8   :  { %v1585_v44 = vmul.f32 %v2381_v43, %v1580_v40 }
 0x6fa   :  { %1658 = vmatmul.mubr.f32.vlgmr.msra.gmra.mrb[14].mxu0 %v1585_v44  ;;  %1729 = vmatmul.mubr.f32.vlgmr.msra.gmra.mrb[14].mxu1 %v1585_v44 }
 0x7cd   :  { %v1659_v52 = vpop.f32.mrb[14].mxu0  ;;  %v1730_v0 = vpop.f32.mrb[14].mxu1 }
 0x7ce   :  { %v1735_v58 = vadd.f32 %v1659_v52, %v3187_v17  ;;  %v1737_v45 = vadd.f32 %v1730_v0, %v312_v48  ;;  %v1661_v10 = vpop.f32.mrb[15].mxu0  ;;  %v1732_v22 = vpop.f32.mrb[15].mxu1 }
 0x7cf   :  { %v1736_v49 = vadd.f32 %v1661_v10, %v311_v63  ;;  %v1738_v62 = vadd.f32 %v1732_v22, %v313_v56 }
 0x7d0   :  { %2382 = vtanh.f32 %v1735_v58 }
 0x7d1   :  { %2384 = vtanh.f32 %v1736_v49 }
 0x7d2   :  { %2386 = vtanh.f32 %v1738_v62 }
 0x7d3   :  { %2388 = vtanh.f32 %v1737_v45 }
 0x7da   :  { %v2383_v60 = vpop.eup %2382 }
 0x7db   :  { %v1743_v30 = vmul.f32 0.5, %v2383_v60  ;;  %v2385_v9 = vpop.eup %2384 }
 0x7dc   :  { %v1744_v51 = vmul.f32 0.5, %v2385_v9  ;;  %v2387_v16 = vpop.eup %2386 }
 0x7dd   :  { %v1746_v34 = vadd.f32 0.5, %v1743_v30  ;;  %v2389_v61 = vpop.eup %2388 }
 0x7de   :  { %v1747_v27 = vadd.f32 0.5, %v1744_v51  ;;  %v1745_v6 = vmul.f32 0.5, %v2389_v61 }
 0x7df   :  { %v1750_v36 = vmul.f32 %v2387_v16, %v1746_v34 }
 0x7e0   :  { %v1749_v18 = vmul.f32 %v1747_v27, %v1583_v25  ;;  %v1748_v47 = vadd.f32 0.5, %v1745_v6 }
 0x7e2   :  { %v1751_v7 = vadd.f32 %v1750_v36, %v1749_v18 }
 0x7e4   :  { %2390 = vtanh.f32 %v1751_v7 }
 0x7ee   :  { %v2391_v13 = vpop.eup %2390 }
 0x7ef   :  { %v1753_v8 = vmul.f32 %v2391_v13, %v1748_v47 }
 0x7f1   :  { %v1761_v2 = vmul.f32 %v1787_v35, %v1753_v8 }
 0x7f3   :  { %1762 = vadd.xlane.f32.xlu1 %v1761_v2 }
 0x880   :  { %v1763_v50 = vpop.xlane.xlu1 %1762 }
 0x881   :  { %v1771_v39 = vadd.f32 %v1788_v38, %v1763_v50 }
 0x883   :  { %1773 = vst.msk [vmem:[%s3122_s6] sm:$0xff] %vm1772_vm0, %v1771_v39 }
 0x884   :  { %1778 = vsyncpa [#allocation5], 1 }

</bundles_post_ra>
